<compile_context>
chip_gen: v5e
topology: v5e:2x2
jax: 0.10.0
libtpu: 0.0.40
codegen_flags: <defaults>
</compile_context>

<pallas_src>
import functools

import jax
import jax.numpy as jnp
from jax.experimental import pallas as pl
from jax.experimental.pallas import tpu as pltpu


def _pam_kernel(p_ref, wc_ref, wl_ref, b_ref, out_ref, *, Bt, N, C):
    """One grid step == Bt batch elements (M = Bt*N rows).

    p_ref  : (Bt*N, 9C)  bf16  im2col patches (N = H*W spatial positions)
    wc_ref : (9C, C)     bf16  conv weight, (tap*in_c, out_c) layout
    wl_ref : (C, 4C)     bf16  [w_q/sqrt(d_k) | w_k | w_v | w_o]
    b_ref  : (1, 4C)     f32   [(b_q+b_conv@w_q)/sqrt(d_k) | b_k+b_conv@w_k |
                                 b_v+b_conv@w_v | b_o]
    out_ref: (Bt*N, C)   f32
    """
    f32 = jnp.float32
    bf16 = jnp.bfloat16

    # ---- 3x3 "same" conv as a single im2col matmul on the MXU --------------
    y = jnp.dot(p_ref[...], wc_ref[...], preferred_element_type=f32)   # (M, C)

    # ---- fused q/k/v projection (scale + conv bias pre-folded in wrapper) ---
    qkv = jnp.dot(y.astype(bf16), wl_ref[:, 0:3 * C],
                  preferred_element_type=f32) + b_ref[:, 0:3 * C]      # (M, 3C)
    q = qkv[:, 0:C].astype(bf16).reshape(Bt, N, C)
    k = qkv[:, C:2 * C].astype(bf16).reshape(Bt, N, C)
    v = qkv[:, 2 * C:3 * C].astype(bf16).reshape(Bt, N, C)

    # ---- batched scaled dot-product attention (one pass, no loop/concat) ----
    # TODO(synk): materializes the full (Bt, N, N) attention tensor; for large
    # H*W (N*N*4B approaching VMEM, especially v7x's 64 MiB) switch to a
    # flash-style online-softmax tiling over key blocks.
    att = jnp.einsum("bnc,bmc->bnm", q, k,
                     preferred_element_type=f32)                       # (Bt,N,N)
    att = jnp.exp(att - jnp.max(att, axis=-1, keepdims=True))
    att = att * pl.reciprocal(jnp.sum(att, axis=-1, keepdims=True),
                              approx=True)
    # TODO(synk): nn.Dropout(p=0.1) on `att` is stochastic; treated as
    # identity (inference mode).
    ctx = jnp.einsum("bnm,bmc->bnc", att.astype(bf16), v,
                     preferred_element_type=f32)                       # (Bt,N,C)
    o = ctx.reshape(Bt * N, C).astype(bf16)                            # (M, C)

    # ---- output projection ---------------------------------------------------
    out = jnp.dot(o, wl_ref[:, 3 * C:4 * C],
                  preferred_element_type=f32) + b_ref[:, 3 * C:4 * C]
    out_ref[...] = out


def position_attention_module(x_nchw, params, *, kernel_size=3, batch_tile=2):
    """x_nchw: (B, C, H, W) float32.  Returns (B, H*W, C) float32."""
    B, C, H, W = x_nchw.shape
    KH = KW = kernel_size
    pad = (kernel_size - 1) // 2
    N = H * W
    Bt = batch_tile if (batch_tile > 0 and B % batch_tile == 0) else 1

    # ---- glue (plain JAX, layout plumbing only) -----------------------------
    # NCHW -> NHWC, zero-pad, im2col -> (B*N, KH*KW*C) patch matrix in bf16.
    x_nhwc = jnp.transpose(x_nchw, (0, 2, 3, 1))
    x_pad = jnp.pad(x_nhwc, ((0, 0), (pad, pad), (pad, pad), (0, 0)))
    taps = [x_pad[:, ki:ki + H, kj:kj + W, :]
            for ki in range(KH) for kj in range(KW)]
    patches = jnp.concatenate(taps, axis=-1).reshape(B * N, KH * KW * C)
    patches = patches.astype(jnp.bfloat16)

    # Conv weight (HWIO) -> (KH*KW*C, C); tap-major order matches the patches.
    w_conv = params["w_conv"].reshape(KH * KW * C, C).astype(jnp.bfloat16)

    # Fold 1/sqrt(d_k) into w_q/b_q and the conv bias into the q/k/v biases;
    # pack all linear weights / biases into single slabs.
    inv_scale = 1.0 / jnp.sqrt(jnp.float32(C))          # d_k == d_model == C
    b_conv = params["b_conv"]
    w_lin = jnp.concatenate(
        [params["w_q"] * inv_scale, params["w_k"], params["w_v"],
         params["w_o"]], axis=1).astype(jnp.bfloat16)                  # (C, 4C)
    b_lin = jnp.concatenate(
        [(params["b_q"] + b_conv @ params["w_q"]) * inv_scale,
         params["b_k"] + b_conv @ params["w_k"],
         params["b_v"] + b_conv @ params["w_v"],
         params["b_o"]]).reshape(1, 4 * C).astype(jnp.float32)         # (1, 4C)

    kernel = functools.partial(_pam_kernel, Bt=Bt, N=N, C=C)
    full2 = lambda i: (0, 0)

    out = pl.pallas_call(
        kernel,
        out_shape=jax.ShapeDtypeStruct((B * N, C), jnp.float32),
        grid=(B // Bt,),
        in_specs=[
            pl.BlockSpec((Bt * N, KH * KW * C), lambda i: (i, 0)),  # patches
            pl.BlockSpec((KH * KW * C, C), full2),                  # conv weight
            pl.BlockSpec((C, 4 * C), full2),                        # packed W
            pl.BlockSpec((1, 4 * C), full2),                        # packed bias
        ],
        out_specs=pl.BlockSpec((Bt * N, C), lambda i: (i, 0)),
        compiler_params=pltpu.CompilerParams(
            dimension_semantics=("parallel",)),
    )(patches, w_conv, w_lin, b_lin)

    return out.reshape(B, N, C)


def reference(x_nchw, params, *, kernel_size=3):
    """Pure-JAX f32 reference mirroring the PyTorch forward (inference mode)."""
    B, C, H, W = x_nchw.shape
    x_nhwc = jnp.transpose(x_nchw, (0, 2, 3, 1))
    y = jax.lax.conv_general_dilated(
        x_nhwc, params["w_conv"], window_strides=(1, 1), padding="SAME",
        dimension_numbers=("NHWC", "HWIO", "NHWC")) + params["b_conv"]
    y = y.reshape(B, H * W, C)                 # == view(bs,c,-1).permute(0,2,1)
    q = y @ params["w_q"] + params["b_q"]
    k = y @ params["w_k"] + params["b_k"]
    v = y @ params["w_v"] + params["b_v"]
    att = jnp.einsum("bnc,bmc->bnm", q, k) / jnp.sqrt(jnp.float32(C))
    att = jax.nn.softmax(att, axis=-1)
    out = jnp.einsum("bnm,bmc->bnc", att, v)
    return out @ params["w_o"] + params["b_o"]


def make_params(key, C, kernel_size=3, scale=0.05):
    keys = jax.random.split(key, 10)
    s = scale
    return {
        # conv weight stored HWIO: (kh, kw, in_c, out_c)
        "w_conv": s * jax.random.normal(keys[0], (kernel_size, kernel_size, C, C), jnp.float32),
        "b_conv": s * jax.random.normal(keys[1], (C,), jnp.float32),
        # linear weights stored as (in, out) == PyTorch weight.T
        "w_q": s * jax.random.normal(keys[2], (C, C), jnp.float32),
        "b_q": s * jax.random.normal(keys[3], (C,), jnp.float32),
        "w_k": s * jax.random.normal(keys[4], (C, C), jnp.float32),
        "b_k": s * jax.random.normal(keys[5], (C,), jnp.float32),
        "w_v": s * jax.random.normal(keys[6], (C, C), jnp.float32),
        "b_v": s * jax.random.normal(keys[7], (C,), jnp.float32),
        "w_o": s * jax.random.normal(keys[8], (C, C), jnp.float32),
        "b_o": s * jax.random.normal(keys[9], (C,), jnp.float32),
    }


if __name__ == "__main__":
    # Small shapes consistent with the module (d_model default 512 -> use 128
    # so the output is lane-dense while staying small); B=4 with Bt=2 gives
    # M=128 matmuls and a 2-step parallel grid (both v7x TCs busy).
    B, C, H, W = 4, 128, 8, 8
    key = jax.random.PRNGKey(0)
    kx, kp = jax.random.split(key)
    x = jax.random.normal(kx, (B, C, H, W), jnp.float32)
    params = make_params(kp, C)

    out = position_attention_module(x, params, batch_tile=2)
    out = jax.block_until_ready(out)

    ref = reference(x, params)
    assert out.shape == (B, H * W, C), out.shape
    max_err = float(jnp.max(jnp.abs(out - ref)))
    # bf16 MXU inputs (f32 accumulation) -> loosened tolerance vs. pure f32.
    assert jnp.allclose(out, ref, rtol=5e-2, atol=5e-2), max_err
    print("KERNEL_OK")
</pallas_src>

<mosaic_0001>
module attributes {stable_mosaic.version = 11 : i64} {
  func.func @_pam_kernel(%arg0: i32, %arg1: memref<128x1152xbf16, #tpu.memory_space<vmem>>, %arg2: memref<1152x128xbf16, #tpu.memory_space<vmem>>, %arg3: memref<128x512xbf16, #tpu.memory_space<vmem>>, %arg4: memref<1x512xf32, #tpu.memory_space<vmem>>, %arg5: memref<128x128xf32, #tpu.memory_space<vmem>>) attributes {dimension_semantics = [#tpu.dimension_semantics<parallel>], iteration_bounds = array<i64: 2>, scalar_prefetch = 0 : i64, scratch_operands = 0 : i64, tpu.core_type = #tpu.core_type<tc>, window_params = [{transform_indices = @transform_0, window_bounds = array<i64: 128, 1152>}, {pipeline_mode = #tpu.pipeline_mode<synchronous>, transform_indices = @transform_1, window_bounds = array<i64: 1152, 128>}, {pipeline_mode = #tpu.pipeline_mode<synchronous>, transform_indices = @transform_2, window_bounds = array<i64: 128, 512>}, {pipeline_mode = #tpu.pipeline_mode<synchronous>, transform_indices = @transform_3, window_bounds = array<i64: 1, 512>}, {transform_indices = @transform_4, window_bounds = array<i64: 128, 128>}]} {
    %c0 = arith.constant 0 : index
    %c0_0 = arith.constant 0 : index
    %0 = vector.load %arg1[%c0, %c0_0] : memref<128x1152xbf16, #tpu.memory_space<vmem>>, vector<128x1152xbf16>
    %c0_1 = arith.constant 0 : index
    %c0_2 = arith.constant 0 : index
    %1 = vector.load %arg2[%c0_1, %c0_2] : memref<1152x128xbf16, #tpu.memory_space<vmem>>, vector<1152x128xbf16>
    %cst = arith.constant dense<0.000000e+00> : vector<128x128xf32>
    %2 = tpu.matmul %0, %1, %cst {dimension_numbers = #tpu.dot_dimension_numbers<[1], [0], [0], [1], [0, 0, 1, 1], [], []>} : vector<128x1152xbf16>, vector<1152x128xbf16>, vector<128x128xf32> -> vector<128x128xf32>
    %3 = arith.truncf %2 : vector<128x128xf32> to vector<128x128xbf16>
    %c0_3 = arith.constant 0 : index
    %c0_4 = arith.constant 0 : index
    %4 = vector.load %arg3[%c0_3, %c0_4] : memref<128x512xbf16, #tpu.memory_space<vmem>>, vector<128x384xbf16>
    %cst_5 = arith.constant dense<0.000000e+00> : vector<128x384xf32>
    %5 = tpu.matmul %3, %4, %cst_5 {dimension_numbers = #tpu.dot_dimension_numbers<[1], [0], [0], [1], [0, 0, 1, 1], [], []>} : vector<128x128xbf16>, vector<128x384xbf16>, vector<128x384xf32> -> vector<128x384xf32>
    %c0_6 = arith.constant 0 : index
    %c0_7 = arith.constant 0 : index
    %6 = vector.load %arg4[%c0_6, %c0_7] : memref<1x512xf32, #tpu.memory_space<vmem>>, vector<1x384xf32>
    %7 = vector.broadcast %6 : vector<1x384xf32> to vector<128x384xf32>
    %8 = arith.addf %5, %7 : vector<128x384xf32>
    %9 = vector.extract_strided_slice %8 {offsets = [0, 0], sizes = [128, 128], strides = [1, 1]} : vector<128x384xf32> to vector<128x128xf32>
    %10 = arith.truncf %9 : vector<128x128xf32> to vector<128x128xbf16>
    %11 = vector.shape_cast %10 : vector<128x128xbf16> to vector<2x64x128xbf16>
    %12 = vector.extract_strided_slice %8 {offsets = [0, 128], sizes = [128, 128], strides = [1, 1]} : vector<128x384xf32> to vector<128x128xf32>
    %13 = arith.truncf %12 : vector<128x128xf32> to vector<128x128xbf16>
    %14 = vector.shape_cast %13 : vector<128x128xbf16> to vector<2x64x128xbf16>
    %15 = vector.extract_strided_slice %8 {offsets = [0, 256], sizes = [128, 128], strides = [1, 1]} : vector<128x384xf32> to vector<128x128xf32>
    %16 = arith.truncf %15 : vector<128x128xf32> to vector<128x128xbf16>
    %17 = vector.shape_cast %16 : vector<128x128xbf16> to vector<2x64x128xbf16>
    "tpu.trace_start"() <{level = 10 : i32, message = "bnc,bmc->bnm"}> : () -> ()
    %cst_8 = arith.constant dense<0.000000e+00> : vector<2x64x64xf32>
    %18 = tpu.matmul %11, %14, %cst_8 {dimension_numbers = #tpu.dot_dimension_numbers<[2], [2], [1], [1], [0, 0, 0, 1, 1, 1], [0], [0]>} : vector<2x64x128xbf16>, vector<2x64x128xbf16>, vector<2x64x64xf32> -> vector<2x64x64xf32>
    "tpu.trace_stop"() : () -> ()
    %cst_9 = arith.constant dense<0xFF800000> : vector<2x64xf32>
    %19 = vector.multi_reduction <maximumf>, %18, %cst_9 [2] : vector<2x64x64xf32> to vector<2x64xf32>
    %20 = vector.shape_cast %19 : vector<2x64xf32> to vector<2x64x1xf32>
    %21 = vector.broadcast %20 : vector<2x64x1xf32> to vector<2x64x64xf32>
    %22 = arith.subf %18, %21 : vector<2x64x64xf32>
    %23 = math.exp %22 : vector<2x64x64xf32>
    %cst_10 = arith.constant dense<0.000000e+00> : vector<2x64xf32>
    %24 = vector.multi_reduction <add>, %23, %cst_10 [2] : vector<2x64x64xf32> to vector<2x64xf32>
    %25 = vector.shape_cast %24 : vector<2x64xf32> to vector<2x64x1xf32>
    %26 = tpu.reciprocal %25 {approx = true} : vector<2x64x1xf32> -> vector<2x64x1xf32>
    %27 = vector.broadcast %26 : vector<2x64x1xf32> to vector<2x64x64xf32>
    %28 = arith.mulf %23, %27 : vector<2x64x64xf32>
    %29 = arith.truncf %28 : vector<2x64x64xf32> to vector<2x64x64xbf16>
    "tpu.trace_start"() <{level = 10 : i32, message = "bnm,bmc->bnc"}> : () -> ()
    %cst_11 = arith.constant dense<0.000000e+00> : vector<2x64x128xf32>
    %30 = tpu.matmul %29, %17, %cst_11 {dimension_numbers = #tpu.dot_dimension_numbers<[2], [1], [1], [2], [0, 0, 0, 1, 1, 2], [0], [0]>} : vector<2x64x64xbf16>, vector<2x64x128xbf16>, vector<2x64x128xf32> -> vector<2x64x128xf32>
    "tpu.trace_stop"() : () -> ()
    %31 = vector.shape_cast %30 : vector<2x64x128xf32> to vector<128x128xf32>
    %32 = arith.truncf %31 : vector<128x128xf32> to vector<128x128xbf16>
    %c0_12 = arith.constant 0 : index
    %c384 = arith.constant 384 : index
    %33 = vector.load %arg3[%c0_12, %c384] : memref<128x512xbf16, #tpu.memory_space<vmem>>, vector<128x128xbf16>
    %cst_13 = arith.constant dense<0.000000e+00> : vector<128x128xf32>
    %34 = tpu.matmul %32, %33, %cst_13 {dimension_numbers = #tpu.dot_dimension_numbers<[1], [0], [0], [1], [0, 0, 1, 1], [], []>} : vector<128x128xbf16>, vector<128x128xbf16>, vector<128x128xf32> -> vector<128x128xf32>
    %c0_14 = arith.constant 0 : index
    %c384_15 = arith.constant 384 : index
    %35 = vector.load %arg4[%c0_14, %c384_15] : memref<1x512xf32, #tpu.memory_space<vmem>>, vector<1x128xf32>
    %36 = vector.broadcast %35 : vector<1x128xf32> to vector<128x128xf32>
    %37 = arith.addf %34, %36 : vector<128x128xf32>
    %c0_16 = arith.constant 0 : index
    %c0_17 = arith.constant 0 : index
    %38 = vector.load %arg5[%c0_16, %c0_17] : memref<128x128xf32, #tpu.memory_space<vmem>>, vector<128x128xf32>
    tpu.vector_store %arg5[%c0_16, %c0_17], %37 {strides = array<i32>} : memref<128x128xf32, #tpu.memory_space<vmem>>, vector<128x128xf32>,
    return
  }
  func.func @transform_0(%arg0: i32) -> (i32, i32) {
    %c0_i32 = arith.constant 0 : i32
    %c0_i32_0 = arith.constant 0 : i32
    return %arg0, %c0_i32 : i32, i32
  }
  func.func @transform_1(%arg0: i32) -> (i32, i32) {
    %c0_i32 = arith.constant 0 : i32
    %c0_i32_0 = arith.constant 0 : i32
    %c0_i32_1 = arith.constant 0 : i32
    return %c0_i32, %c0_i32_0 : i32, i32
  }
  func.func @transform_2(%arg0: i32) -> (i32, i32) {
    %c0_i32 = arith.constant 0 : i32
    %c0_i32_0 = arith.constant 0 : i32
    %c0_i32_1 = arith.constant 0 : i32
    return %c0_i32, %c0_i32_0 : i32, i32
  }
  func.func @transform_3(%arg0: i32) -> (i32, i32) {
    %c0_i32 = arith.constant 0 : i32
    %c0_i32_0 = arith.constant 0 : i32
    %c0_i32_1 = arith.constant 0 : i32
    return %c0_i32, %c0_i32_0 : i32, i32
  }
  func.func @transform_4(%arg0: i32) -> (i32, i32) {
    %c0_i32 = arith.constant 0 : i32
    %c0_i32_0 = arith.constant 0 : i32
    return %arg0, %c0_i32 : i32, i32
  }
}

</mosaic_0001>

<bundles_post_ra>
// kernel: tpu_custom_call.1
= control target key start
LH: loop header
LB: loop body
LE: loop exit
PB: predicated region body
PF: predicated region fallthrough
CT: control target
= control target key end

     0   :  { %9 = vsyncpa [#allocation3], 0  ;;  %s4949_s0 = inlined_call_operand.hbm [shape: bf16[256,1152], index: 0, kind: input, shape index: {}]   ;;  %s4950_s1 = inlined_call_operand.hbm [shape: bf16[1152,128], index: 1, kind: input, shape index: {}]   ;;  %s4951_s2 = inlined_call_operand.hbm [shape: bf16[128,512], index: 2, kind: input, shape index: {}]   ;;  %s4952_s3 = inlined_call_operand.hbm [shape: f32[1,512], index: 3, kind: input, shape index: {}]   ;;  %s4953_s4 = inlined_call_operand.hbm [shape: f32[256,128], index: 4, kind: output, shape index: {}]  }
   0x1   :  { %11 = vsyncpa [#allocation3 + $0x1], 0 }
   0x2   :  { %12 = vsyncpa [#allocation6], 0 }
   0x3   :  { %13 = vsyncpa [#allocation9], 0 }
   0x4   :  { %14 = vsyncpa [#allocation4], 0 }
   0x5   :  { %16 = vsyncpa [#allocation4 + $0x1], 0  ;;  %s4191_s15 = smov 0   ;;  %s4193_s16 = smov 0  }
   0x6   :  { %s4195_s17 = smov 0   ;;  %s4197_s18 = smov 0  }
   0x7 LB: > { %s4212_s19 = sadd.s32 4294967295, %s4153_s18   ;;  %s2882_s20 = sadd.s32 4294967294, %s4153_s18   ;;  %s4153_s18 = sphi %s4197_s18, %s4964_s18   ;;  %s4149_s17 = sphi %s4195_s17, %s4963_s17   ;;  %s4145_s16 = sphi %s4193_s16, %s4962_s16   ;;  %s4141_s15 = sphi %s4191_s15, %s4961_s15  }
   0x8   : > { %p42_p0 = scmp.ne.s32.totalorder %s4145_s16, %s4141_s15  ;;  %p43_p1 = scmp.eq.s32.totalorder %s4212_s19, 0 }
   0x9   : > { %p129_p2 = scmp.eq.s32.totalorder %s4212_s19, 1  ;;  %p135_p3 = scmp.eq.s32.totalorder %s2882_s20, 1 }
   0xa   : > { %p4221_p4 = por %p43_p1, %p42_p0  ;;  %p2883_p5 = scmp.ge.s32.totalorder %s4153_s18, 1 }
   0xb   : > { %p4226_p6 = por %p135_p3, %p42_p0  ;;  %p142_p7 = scmp.lt.s32.totalorder %s4153_s18, 3 }
   0xc   : > { %s153_s25 = sshll.u32 %s4950_s1, 4  ;;  %s4155_s27 = smov [#allocation5]   ;;  %s154_s25 = int_to_ptr.hbm [resolvable:$true] %s153_s25 }
   0xd   : > { %p4234_p8 = pnand %p2883_p5, %p142_p7  ;;  %s155_s28 = sshll.u32 %s4155_s27, 4  ;;  %s156_s28 = int_to_ptr.vmem [resolvable:$true] %s155_s28 }
   0xe   : > { %s167_s6 = sshll.u32 %s4951_s2, 4  ;;  %s4156_s7 = smov 64   ;;  %s168_s6 = int_to_ptr.hbm [resolvable:$true] %s167_s6 }
   0xf   : > { %p3825_p9 = pneg %p4234_p8  ;;  %s4157_s8 = smov 4  }
  0x10   : > { %s4158_s9 = smov [#allocation7]   ;;  %s4159_s11 = smov 256  }
  0x11   : > { %p4242_p10 = pnand %p3825_p9, %p43_p1  ;;  %s169_s10 = sshll.u32 %s4158_s9, 4  ;;  %s170_s10 = int_to_ptr.vmem [resolvable:$true] %s169_s10 }
  0x12   : > { %s4160_s12 = smov 16   ;;  %s182_s20 = sshll.u32 %s4952_s3, 4  ;;  %s183_s20 = int_to_ptr.hbm [resolvable:$true] %s182_s20 }
  0x13   : > { %3828 = dma.hbm_to_vmem [thread:$0]  (!%p4242_p10), %s154_s25, 9216, %s156_s28, [#allocation6], %s4156_s7, %s4156_s7, %s4157_s8  }
  0x14   : > { %3831 = dma.hbm_to_vmem [thread:$0]  (!%p4242_p10), %s168_s6, 4096, %s170_s10, [#allocation6], %s4159_s11, %s4159_s11, %s4160_s12  }
  0x15   : > { %s4161_s23 = smov [#allocation8]   ;;  %s4260_s25 = sadd.s32 1, %s4153_s18  }
  0x16   : > { %s184_s24 = sshll.u32 %s4161_s23, 4  ;;  %s26_s27 = ssub.s32 %s4153_s18, %s4260_s25  ;;  %s185_s24 = int_to_ptr.vmem [resolvable:$true] %s184_s24 }
  0x17   : > { %3834 = dma.hbm_to_vmem [thread:$0]  (!%p4242_p10), %s183_s20, 64, %s185_s24, [#allocation9]  }
  0x18   : > { %s29_s28 = sadd.s32 1, %s4149_s17  ;;  %p27_p12 = scmp.eq.s32.totalorder %s26_s27, 0 }
  0x19   : > { %p36_p13 = scmp.ne.s32.totalorder %s4149_s17, %s4145_s16  ;;  %p37_p0 = scmp.eq.s32.totalorder %s4153_s18, 0 }
  0x1a   : > { %p3846_p3 = scmp.lt.s32.totalorder %s4153_s18, 2  ;;  %s195_s6 = sand.u32 1, %s4149_s17  }
  0x1b   : > { %s4270_s30 = scalar_select %p27_p12, %s4149_s17, %s29_s28  }
  0x1c   : > { %p38_p5 = por %p37_p0, %p36_p13  ;;  %p4274_p7 = por %p129_p2, %p36_p13 }
  0x1d   : > { %s3807_s29 = smul.u32 576, %s4153_s18  ;;  %s196_s20 = scalar_lea.sflag [#allocation3], %s195_s6 }
  0x1e   : > { %s3806_s7 = smul.u32 576, %s195_s6  ;;  %p4283_p9 = pnand %p3846_p3, %p38_p5 }
  0x1f   : > { %s205_s10 = scalar_lea.hbm %s4949_s0, %s3807_s29  ;;  %s4056_s29 = scalar_lea.hbm %s4949_s0, 1152 }
  0x20   : > { %s206_s12 = sshll.u32 %s205_s10, 4  ;;  %s199_s13 = scalar_lea.vmem [#allocation2], %s3806_s7  ;;  %s207_s12 = int_to_ptr.hbm [resolvable:$true] %s206_s12 }
  0x21   : > { %s208_s14 = sshll.u32 %s199_s13, 4  ;;  %s4049_s23 = sshra.s32 %s207_s12, 4  ;;  %s209_s14 = int_to_ptr.vmem [resolvable:$true] %s208_s14  ;;  %s4050_s23 = int_to_ptr.hbm [resolvable:$true] %s4049_s23 }
  0x22   : > { %s4051_s24 = scalar_lea.hbm %s4050_s23, 576  ;;  %p4053_p10 = pneg %p4283_p9 }
  0x23   : > { %p4052_p2 = scmp.ne.s32.totalorder %s4050_s23, %s4051_s24  ;;  %p4057_p0 = scmp.lt.s32.totalorder %s4050_s23, %s4949_s0 }
  0x24   : > { %p4058_p3 = scmp.lt.s32.totalorder %s4056_s29, %s4051_s24 }
  0x25   : > { %p4054_p12 = pnand %p4053_p10, %p4052_p2 }
  0x26   : > { %p4059_p5 = por %p4058_p3, %p4057_p0 }
  0x27   : > { %p4055_p13 = pneg %p4054_p12 }
  0x29   : > { %p4060_p11 = pnand %p4059_p5, %p4055_p13 }
  0x2b   : > { %4063 = shalt.err (!%p4060_p11)
}
  0x2c   : > { %s4162_s6 = smov 576   ;;  %s4163_s7 = smov 36  }
  0x2d   : > { %3838 = dma.hbm_to_vmem [thread:$0]  (!%p4283_p9), %s207_s12, 9216, %s209_s14, %s196_s20, %s4162_s6, %s4162_s6, %s4163_s7  }
  0x2e   : > { %220 = sbr.rel (%p4234_p8) target bundleno = 1529 (0x5f9), region = 36  ;;  %s4300_s10 = sand.u32 (!%p4234_p8), 1, %s4145_s16  }
  0x2f   : > { %s3808_s13 = smul.u32 (!%p4234_p8), 576, %s4300_s10  ;;  %s223_s23 = scalar_lea.sflag (!%p4234_p8), [#allocation3], %s4300_s10 }
  0x31   : > { %s4304_s24 = scalar_lea.vmem (!%p4234_p8), [#allocation2], %s3808_s13 }
  0x33   : > { %4124 = dma.done.wait (%p4221_p4), %s223_s23, 9216  }
  0x34   : > { %4126 = vsyncadd (%p4221_p4), %s223_s23, 4294958080 }
  0x35   : > { %4128 = dma.done.wait (%p43_p1), [#allocation6], 13312  }
  0x36   : > { %4130 = vsyncadd (%p43_p1), [#allocation6], 4294953984 }
  0x37   : > { %4132 = dma.done.wait (%p43_p1), [#allocation9], 64  }
  0x38   : > { %4134 = vsyncadd (%p43_p1), [#allocation9], 4294967232  ;;  %v3692_v0 = vld [vmem:[#allocation5 + $0x38] sm:$0xff]  ;;  %v3691_v2 = vld [vmem:[#allocation5 + $0x30] sm:$0xff]  ;;  %vm2260_vm0 = vcmask 523264   ;;  %s2895_s21 = sshll.u32 %s4300_s10, 7 }
  0x39   : > { %v3700_v1 = vld [vmem:[#allocation5 + $0x78] sm:$0xff]  ;;  %1294 = vmatpush.bf16.msra.mxu0 %v3692_v0  ;;  %3790 = vmatpush.bf16.msra.mxu2 %v3692_v0  ;;  %v3699_v3 = vld [vmem:[#allocation5 + $0x70] sm:$0xff]  ;;  %v3690_v4 = vld [vmem:[#allocation5 + $0x28] sm:$0xff]  ;;  %s4882_s26 = scalar_lea.vmem [#allocation10], %s2895_s21  ;;  %s3789_s11 = sshll.u32 %s4212_s19, 7 }
  0x3a   : > { %1343 = vmatpush.bf16.msra.mxu1 %v3700_v1  ;;  %3798 = vmatpush.bf16.msra.mxu3 %v3700_v1  ;;  %v3698_v5 = vld [vmem:[#allocation5 + $0x68] sm:$0xff]  ;;  %v3689_v6 = vld [vmem:[#allocation5 + $0x20] sm:$0xff]  ;;  %v3688_v8 = vld [vmem:[#allocation5 + $0x18] sm:$0xff]  ;;  %s2776_s20 = scalar_lea.hbm %s4953_s4, %s3789_s11  ;;  %s2777_s27 = sshll.u32 %s4882_s26, 4  ;;  %s2778_s27 = int_to_ptr.vmem [resolvable:$true] %s2777_s27 }
  0x3b   : > { %v3697_v7 = vld [vmem:[#allocation5 + $0x60] sm:$0xff]  ;;  %v3696_v9 = vld [vmem:[#allocation5 + $0x58] sm:$0xff]  ;;  %v3687_v10 = vld [vmem:[#allocation5 + $0x10] sm:$0xff]  ;;  %s2779_s28 = sshll.u32 %s2776_s20, 4  ;;  %s2765_s29 = scalar_lea.sflag [#allocation4], %s4300_s10  ;;  %s2780_s28 = int_to_ptr.hbm [resolvable:$true] %s2779_s28 }
  0x3c   : > { %v3695_v11 = vld [vmem:[#allocation5 + $0x50] sm:$0xff]  ;;  %v3686_v12 = vld [vmem:[#allocation5 + $0x8] sm:$0xff]  ;;  %v3685_v14 = vld [vmem:[#allocation5] sm:$0xff]  ;;  %s4093_s8 = sshra.s32 %s2780_s28, 4  ;;  %s4099_s7 = scalar_lea.hbm %s4953_s4, 256  ;;  %s4094_s8 = int_to_ptr.hbm [resolvable:$true] %s4093_s8 }
  0x3d   : > { %1295 = vmatpush.bf16.msra.mxu0 %v3691_v2  ;;  %3791 = vmatpush.bf16.msra.mxu2 %v3691_v2  ;;  %v3694_v13 = vld [vmem:[#allocation5 + $0x48] sm:$0xff]  ;;  %v3693_v15 = vld [vmem:[#allocation5 + $0x40] sm:$0xff]  ;;  %v3114_v18 = vld [vmem:[%s4304_s24 + $0x1b0] sm:$0xf]  ;;  %s4095_s19 = scalar_lea.hbm %s4094_s8, 128  ;;  %p4100_p11 = scmp.lt.s32.totalorder %s4094_s8, %s4953_s4 }
  0x3e   : > { %1344 = vmatpush.bf16.msra.mxu1 %v3699_v3  ;;  %3799 = vmatpush.bf16.msra.mxu3 %v3699_v3  ;;  %v2898_v16 = vld [vmem:[%s4304_s24] sm:$0xf]  ;;  %v3617_v17 = vld [vmem:[%s4304_s24 + $0x20] sm:$0xf0]  ;;  %v3671_v19 = vld [vmem:[%s4304_s24 + $0x1d0] sm:$0xf0]  ;;  %p4096_p1 = scmp.ne.s32.totalorder %s4094_s8, %s4095_s19  ;;  %p4101_p9 = scmp.lt.s32.totalorder %s4099_s7, %s4095_s19 }
  0x3f   : > { %v3613_v20 = vld [vmem:[%s4304_s24 + $0x4] sm:$0xf]  ;;  %v2900_v21 = vld [vmem:[%s4304_s24 + $0x24] sm:$0xf0]  ;;  %v3667_v22 = vld [vmem:[%s4304_s24 + $0x1b4] sm:$0xf]  ;;  %v2899_v26 = vor.u32 %v3617_v17, %v2898_v16  ;;  %v3115_v27 = vor.u32 %v3671_v19, %v3114_v18 }
  0x40   : > { %v3116_v23 = vld [vmem:[%s4304_s24 + $0x1d4] sm:$0xf0]  ;;  %v2903_v28 = vor.u32 %v3613_v20, %v2900_v21  ;;  %v3707_v30 = vld [vmem:[#allocation5 + $0xb0] sm:$0xff]  ;;  %v3706_v32 = vld [vmem:[#allocation5 + $0xa8] sm:$0xff]  ;;  %p4097_p4 = pnand %p4096_p1, %p4274_p7  ;;  %p4102_p2 = por %p4101_p9, %p4100_p11 }
  0x41   : > { %1296 = vmatpush.bf16.msra.mxu0 %v3690_v4  ;;  %3792 = vmatpush.bf16.msra.mxu2 %v3690_v4  ;;  %v3708_v24 = vld [vmem:[#allocation5 + $0xb8] sm:$0xff]  ;;  %v3119_v29 = vor.u32 %v3667_v22, %v3116_v23  ;;  %v3715_v31 = vld [vmem:[#allocation5 + $0xf0] sm:$0xff]  ;;  %v3714_v33 = vld [vmem:[#allocation5 + $0xe8] sm:$0xff] }
  0x42   : > { %1345 = vmatpush.bf16.msra.mxu1 %v3698_v5  ;;  %3800 = vmatpush.bf16.msra.mxu3 %v3698_v5  ;;  %v3716_v25 = vld [vmem:[#allocation5 + $0xf8] sm:$0xff]  ;;  %v3705_v34 = vld [vmem:[#allocation5 + $0xa0] sm:$0xff]  ;;  %v2934_v36 = vld [vmem:[%s4304_s24 + $0x48] sm:$0xf]  ;;  %p4098_p8 = pneg %p4097_p4 }
  0x43   : > { %v3713_v35 = vld [vmem:[#allocation5 + $0xe0] sm:$0xff]  ;;  %v3626_v37 = vld [vmem:[%s4304_s24 + $0x68] sm:$0xf0]  ;;  %v3150_v38 = vld [vmem:[%s4304_s24 + $0x1f8] sm:$0xf] }
  0x44   : > { %v3680_v39 = vld [vmem:[%s4304_s24 + $0x218] sm:$0xf0]  ;;  %v3622_v40 = vld [vmem:[%s4304_s24 + $0x4c] sm:$0xf]  ;;  %v2936_v41 = vld [vmem:[%s4304_s24 + $0x6c] sm:$0xf0]  ;;  %v2935_v46 = vor.u32 %v3626_v37, %v2934_v36  ;;  %p4103_p10 = pnand %p4102_p2, %p4098_p8 }
  0x45   : > { %1297 = vmatpush.bf16.msra.mxu0 %v3689_v6  ;;  %3793 = vmatpush.bf16.msra.mxu2 %v3689_v6  ;;  %v3676_v42 = vld [vmem:[%s4304_s24 + $0x1fc] sm:$0xf]  ;;  %v3152_v43 = vld [vmem:[%s4304_s24 + $0x21c] sm:$0xf0]  ;;  %v3151_v47 = vor.u32 %v3680_v39, %v3150_v38  ;;  %v2939_v48 = vor.u32 %v3622_v40, %v2936_v41  ;;  %v3703_v50 = vld [vmem:[#allocation5 + $0x90] sm:$0xff] }
  0x46   : > { %1346 = vmatpush.bf16.msra.mxu1 %v3697_v7  ;;  %3801 = vmatpush.bf16.msra.mxu3 %v3697_v7  ;;  %v3704_v44 = vld [vmem:[#allocation5 + $0x98] sm:$0xff]  ;;  %v3155_v49 = vor.u32 %v3676_v42, %v3152_v43  ;;  %v3711_v51 = vld [vmem:[#allocation5 + $0xd0] sm:$0xff]  ;;  %v3702_v52 = vld [vmem:[#allocation5 + $0x88] sm:$0xff] }
  0x47   : > { %v3712_v45 = vld [vmem:[#allocation5 + $0xd8] sm:$0xff]  ;;  %v3710_v53 = vld [vmem:[#allocation5 + $0xc8] sm:$0xff]  ;;  %v3701_v54 = vld [vmem:[#allocation5 + $0x80] sm:$0xff] }
  0x48   : > { %v3709_v55 = vld [vmem:[#allocation5 + $0xc0] sm:$0xff]  ;;  %v2970_v56 = vld [vmem:[%s4304_s24 + $0x90] sm:$0xf]  ;;  %v3635_v57 = vld [vmem:[%s4304_s24 + $0xb0] sm:$0xf0] }
  0x49   : > { %1298 = vmatpush.bf16.msra.mxu0 %v3688_v8  ;;  %3794 = vmatpush.bf16.msra.mxu2 %v3688_v8  ;;  %v3631_v58 = vld [vmem:[%s4304_s24 + $0x94] sm:$0xf]  ;;  %v2906_v59 = vld [vmem:[%s4304_s24 + $0x8] sm:$0xf]  ;;  %v3618_v60 = vld [vmem:[%s4304_s24 + $0x28] sm:$0xf0]  ;;  %v2971_v0 = vor.u32 %v3635_v57, %v2970_v56 }
  0x4a   : > { %1347 = vmatpush.bf16.msra.mxu1 %v3696_v9  ;;  %3802 = vmatpush.bf16.msra.mxu3 %v3696_v9  ;;  %v2972_v61 = vld [vmem:[%s4304_s24 + $0xb4] sm:$0xf0]  ;;  %v3614_v62 = vld [vmem:[%s4304_s24 + $0xc] sm:$0xf]  ;;  %v2908_v63 = vld [vmem:[%s4304_s24 + $0x2c] sm:$0xf0]  ;;  %v2907_v1 = vor.u32 %v3618_v60, %v2906_v59 }
  0x4b   : > { %v2975_v2 = vor.u32 %v3631_v58, %v2972_v61  ;;  %v2911_v3 = vor.u32 %v3614_v62, %v2908_v63  ;;  %v3724_v4 = vld [vmem:[#allocation5 + $0x138] sm:$0xff]  ;;  %v3723_v6 = vld [vmem:[#allocation5 + $0x130] sm:$0xff]  ;;  %v3722_v8 = vld [vmem:[#allocation5 + $0x128] sm:$0xff] }
  0x4c   : > { %v3732_v5 = vld [vmem:[#allocation5 + $0x178] sm:$0xff]  ;;  %v3731_v7 = vld [vmem:[#allocation5 + $0x170] sm:$0xff]  ;;  %v3730_v9 = vld [vmem:[#allocation5 + $0x168] sm:$0xff] }
  0x4d   : > { %1299 = vmatpush.bf16.msra.mxu0 %v3687_v10  ;;  %3795 = vmatpush.bf16.msra.mxu2 %v3687_v10  ;;  %v3006_v10 = vld [vmem:[%s4304_s24 + $0xd8] sm:$0xf]  ;;  %v3623_v16 = vld [vmem:[%s4304_s24 + $0x54] sm:$0xf]  ;;  %v3721_v18 = vld [vmem:[#allocation5 + $0x120] sm:$0xff] }
  0x4e   : > { %1348 = vmatpush.bf16.msra.mxu1 %v3695_v11  ;;  %3803 = vmatpush.bf16.msra.mxu3 %v3695_v11  ;;  %v3644_v11 = vld [vmem:[%s4304_s24 + $0xf8] sm:$0xf0]  ;;  %v2944_v17 = vld [vmem:[%s4304_s24 + $0x74] sm:$0xf0]  ;;  %v3729_v19 = vld [vmem:[#allocation5 + $0x160] sm:$0xff] }
  0x4f   : > { %v3007_v20 = vor.u32 %v3644_v11, %v3006_v10  ;;  %v2947_v23 = vor.u32 %v3623_v16, %v2944_v17  ;;  %v3632_v36 = vld [vmem:[%s4304_s24 + $0x9c] sm:$0xf]  ;;  %v2980_v37 = vld [vmem:[%s4304_s24 + $0xbc] sm:$0xf0]  ;;  %v3050_v56 = vld [vmem:[%s4304_s24 + $0x128] sm:$0xf] }
  0x50   : > { %v3717_v38 = vld [vmem:[#allocation5 + $0x100] sm:$0xff]  ;;  %v2983_v43 = vor.u32 %v3632_v36, %v2980_v37  ;;  %v3654_v57 = vld [vmem:[%s4304_s24 + $0x148] sm:$0xf0]  ;;  %v2914_v58 = vld [vmem:[%s4304_s24 + $0x10] sm:$0xf] }
  0x51   : > { %1300 = vmatpush.bf16.msra.mxu0 %v3686_v12  ;;  %3796 = vmatpush.bf16.msra.mxu2 %v3686_v12  ;;  %v3640_v12 = vld [vmem:[%s4304_s24 + $0xdc] sm:$0xf]  ;;  %v3725_v39 = vld [vmem:[#allocation5 + $0x140] sm:$0xff]  ;;  %v3619_v59 = vld [vmem:[%s4304_s24 + $0x30] sm:$0xf0] }
  0x52   : > { %1349 = vmatpush.bf16.msra.mxu1 %v3694_v13  ;;  %3804 = vmatpush.bf16.msra.mxu3 %v3694_v13  ;;  %v3008_v13 = vld [vmem:[%s4304_s24 + $0xfc] sm:$0xf0]  ;;  %v3650_v60 = vld [vmem:[%s4304_s24 + $0x12c] sm:$0xf]  ;;  %v3052_v61 = vld [vmem:[%s4304_s24 + $0x14c] sm:$0xf0] }
  0x53   : > { %v3011_v22 = vor.u32 %v3640_v12, %v3008_v13  ;;  %v3615_v62 = vld [vmem:[%s4304_s24 + $0x14] sm:$0xf]  ;;  %v2916_v63 = vld [vmem:[%s4304_s24 + $0x34] sm:$0xf0]  ;;  %v3628_v12 = vld [vmem:[%s4304_s24 + $0x78] sm:$0xf0] }
  0x54   : > { %v3663_v10 = vld [vmem:[%s4304_s24 + $0x190] sm:$0xf0]  ;;  %v2950_v11 = vld [vmem:[%s4304_s24 + $0x58] sm:$0xf]  ;;  %v2952_v16 = vld [vmem:[%s4304_s24 + $0x7c] sm:$0xf0] }
  0x55   : > { %1301 = vmatpush.bf16.msra.mxu0 %v3685_v14  ;;  %3797 = vmatpush.bf16.msra.mxu2 %v3685_v14  ;;  %v2942_v14 = vld [vmem:[%s4304_s24 + $0x50] sm:$0xf]  ;;  %v3659_v13 = vld [vmem:[%s4304_s24 + $0x174] sm:$0xf]  ;;  %v3746_v17 = vld [vmem:[#allocation5 + $0x1e8] sm:$0xff] }
  0x56   : > { %1350 = vmatpush.bf16.msra.mxu1 %v3693_v15  ;;  %3805 = vmatpush.bf16.msra.mxu3 %v3693_v15  ;;  %v3627_v15 = vld [vmem:[%s4304_s24 + $0x70] sm:$0xf0]  ;;  %v2988_v36 = vld [vmem:[%s4304_s24 + $0xc4] sm:$0xf0] }
  0x57   : > { %v2943_v21 = vor.u32 %v3627_v15, %v2942_v14  ;;  %v3088_v14 = vld [vmem:[%s4304_s24 + $0x194] sm:$0xf0]  ;;  %v3624_v15 = vld [vmem:[%s4304_s24 + $0x5c] sm:$0xf]  ;;  %v3742_v37 = vld [vmem:[#allocation5 + $0x1c8] sm:$0xff] }
  0x58   : > { %1302 = vmatmul.bf16.vlgmr.msra.gmra.mxu0 %v2899_v26  ;;  %1332 = vmatmul.bf16.vlgmr.msra.gmra.mxu2 %v3115_v27  ;;  %v3719_v26 = vld [vmem:[#allocation5 + $0x110] sm:$0xff] }
  0x59   : > { %1392 = vmatpush.bf16.msrb.mxu2 %v3708_v24  ;;  %1351 = vmatmul.bf16.vlgmr.msra.gmra.mxu1 %v2903_v28  ;;  %v3720_v24 = vld [vmem:[#allocation5 + $0x118] sm:$0xff]  ;;  %v3727_v27 = vld [vmem:[#allocation5 + $0x150] sm:$0xff]  ;;  %v3718_v28 = vld [vmem:[#allocation5 + $0x108] sm:$0xff] }
  0x5a   : > { %1441 = vmatpush.bf16.msrb.mxu3 %v3716_v25  ;;  %1490 = vmatpush.bf16.msrb.mxu0 %v3724_v4  ;;  %v3728_v25 = vld [vmem:[#allocation5 + $0x158] sm:$0xff] }
  0x5b   : > { %1381 = vmatmul.bf16.vlgmr.msra.gmra.mxu3 %v3119_v29  ;;  %1539 = vmatpush.bf16.msrb.mxu1 %v3732_v5  ;;  %v3726_v29 = vld [vmem:[#allocation5 + $0x148] sm:$0xff]  ;;  %v3740_v4 = vld [vmem:[#allocation5 + $0x1b8] sm:$0xff] }
  0x5c   : > { %v3748_v5 = vld [vmem:[#allocation5 + $0x1f8] sm:$0xff] }
  0x5d   : > { %1393 = vmatpush.bf16.msrb.mxu2 %v3707_v30  ;;  %v3042_v30 = vld [vmem:[%s4304_s24 + $0x120] sm:$0xf] }
  0x5e   : > { %1442 = vmatpush.bf16.msrb.mxu3 %v3715_v31  ;;  %1491 = vmatpush.bf16.msrb.mxu0 %v3723_v6  ;;  %v3653_v31 = vld [vmem:[%s4304_s24 + $0x140] sm:$0xf0]  ;;  %v3739_v6 = vld [vmem:[#allocation5 + $0x1b0] sm:$0xff] }
  0x5f   : > { %1540 = vmatpush.bf16.msrb.mxu1 %v3731_v7  ;;  %v3043_v40 = vor.u32 %v3653_v31, %v3042_v30  ;;  %v3747_v7 = vld [vmem:[#allocation5 + $0x1f0] sm:$0xff]  ;;  %v3672_v30 = vld [vmem:[%s4304_s24 + $0x1d8] sm:$0xf0]  ;;  %v2986_v31 = vld [vmem:[%s4304_s24 + $0xa0] sm:$0xf] }
  0x61   : > { %1394 = vmatpush.bf16.msrb.mxu2 %v3706_v32  ;;  %v3649_v32 = vld [vmem:[%s4304_s24 + $0x124] sm:$0xf] }
  0x62   : > { %1443 = vmatpush.bf16.msrb.mxu3 %v3714_v33  ;;  %1492 = vmatpush.bf16.msrb.mxu0 %v3722_v8  ;;  %v3044_v33 = vld [vmem:[%s4304_s24 + $0x144] sm:$0xf0] }
  0x63   : > { %1541 = vmatpush.bf16.msrb.mxu1 %v3730_v9  ;;  %v3047_v42 = vor.u32 %v3649_v32, %v3044_v33  ;;  %v3738_v8 = vld [vmem:[#allocation5 + $0x1a8] sm:$0xff]  ;;  %v3086_v9 = vld [vmem:[%s4304_s24 + $0x170] sm:$0xf]  ;;  %v3637_v32 = vld [vmem:[%s4304_s24 + $0xc0] sm:$0xf0] }
  0x64   : > { %v3668_v33 = vld [vmem:[%s4304_s24 + $0x1bc] sm:$0xf] }
  0x65   : > { %1395 = vmatpush.bf16.msrb.mxu2 %v3705_v34  ;;  %v2978_v34 = vld [vmem:[%s4304_s24 + $0x98] sm:$0xf] }
  0x66   : > { %1444 = vmatpush.bf16.msrb.mxu3 %v3713_v35  ;;  %1493 = vmatpush.bf16.msrb.mxu0 %v3721_v18  ;;  %v3636_v35 = vld [vmem:[%s4304_s24 + $0xb8] sm:$0xf0]  ;;  %v3087_v18 = vor.u32 %v3663_v10, %v3086_v9 }
  0x67   : > { %1542 = vmatpush.bf16.msrb.mxu1 %v3729_v19  ;;  %v2979_v41 = vor.u32 %v3636_v35, %v2978_v34  ;;  %v2951_v19 = vor.u32 %v3628_v12, %v2950_v11  ;;  %v3124_v34 = vld [vmem:[%s4304_s24 + $0x1dc] sm:$0xf0]  ;;  %v3633_v35 = vld [vmem:[%s4304_s24 + $0xa4] sm:$0xf] }
  0x68   : > { %1307 = vmatmul.bf16.gmra.mxu0 %v2935_v46  ;;  %1337 = vmatmul.bf16.gmra.mxu2 %v3151_v47  ;;  %v3658_v46 = vld [vmem:[%s4304_s24 + $0x16c] sm:$0xf]  ;;  %v3014_v47 = vld [vmem:[%s4304_s24 + $0xe0] sm:$0xf] }
  0x69   : > { %1396 = vmatpush.bf16.msrb.mxu2 %v3704_v44  ;;  %1356 = vmatmul.bf16.gmra.mxu1 %v2939_v48  ;;  %v3078_v44 = vld [vmem:[%s4304_s24 + $0x168] sm:$0xf]  ;;  %v3645_v48 = vld [vmem:[%s4304_s24 + $0x100] sm:$0xf0] }
  0x6a   : > { %1445 = vmatpush.bf16.msrb.mxu3 %v3712_v45  ;;  %1494 = vmatpush.bf16.msrb.mxu0 %v3720_v24  ;;  %v3662_v45 = vld [vmem:[%s4304_s24 + $0x188] sm:$0xf0]  ;;  %v3736_v24 = vld [vmem:[#allocation5 + $0x198] sm:$0xff] }
  0x6b   : > { %1386 = vmatmul.bf16.gmra.mxu3 %v3155_v49  ;;  %1543 = vmatpush.bf16.msrb.mxu1 %v3728_v25  ;;  %v3080_v49 = vld [vmem:[%s4304_s24 + $0x18c] sm:$0xf0]  ;;  %v3744_v25 = vld [vmem:[#allocation5 + $0x1d8] sm:$0xff] }
  0x6d   : > { %1397 = vmatpush.bf16.msrb.mxu2 %v3703_v50  ;;  %v3641_v50 = vld [vmem:[%s4304_s24 + $0xe4] sm:$0xf] }
  0x6e   : > { %1446 = vmatpush.bf16.msrb.mxu3 %v3711_v51  ;;  %1495 = vmatpush.bf16.msrb.mxu0 %v3719_v26  ;;  %v3016_v51 = vld [vmem:[%s4304_s24 + $0x104] sm:$0xf0]  ;;  %v3735_v26 = vld [vmem:[#allocation5 + $0x190] sm:$0xff] }
  0x6f   : > { %1544 = vmatpush.bf16.msrb.mxu1 %v3727_v27  ;;  %v3743_v27 = vld [vmem:[#allocation5 + $0x1d0] sm:$0xff] }
  0x71   : > { %1398 = vmatpush.bf16.msrb.mxu2 %v3702_v52  ;;  %v3079_v52 = vor.u32 %v3662_v45, %v3078_v44  ;;  %v3741_v45 = vld [vmem:[#allocation5 + $0x1c0] sm:$0xff] }
  0x72   : > { %1447 = vmatpush.bf16.msrb.mxu3 %v3710_v53  ;;  %1496 = vmatpush.bf16.msrb.mxu0 %v3718_v28  ;;  %v3015_v53 = vor.u32 %v3645_v48, %v3014_v47  ;;  %v3734_v28 = vld [vmem:[#allocation5 + $0x188] sm:$0xff] }
  0x73   : > { %1545 = vmatpush.bf16.msrb.mxu1 %v3726_v29  ;;  %v3122_v29 = vld [vmem:[%s4304_s24 + $0x1b8] sm:$0xf] }
  0x75   : > { %1399 = vmatpush.bf16.msrb.mxu2 %v3701_v54  ;;  %v3083_v54 = vor.u32 %v3658_v46, %v3080_v49 }
  0x76   : > { %1448 = vmatpush.bf16.msrb.mxu3 %v3709_v55  ;;  %1497 = vmatpush.bf16.msrb.mxu0 %v3717_v38  ;;  %v3019_v55 = vor.u32 %v3641_v50, %v3016_v51  ;;  %v3123_v38 = vor.u32 %v3672_v30, %v3122_v29 }
  0x77   : > { %1546 = vmatpush.bf16.msrb.mxu1 %v3725_v39  ;;  %v2987_v39 = vor.u32 %v3637_v32, %v2986_v31  ;;  %v3756_v31 = vld [vmem:[#allocation5 + $0x238] sm:$0xff] }
  0x78   : > { %1312 = vmatmul.bf16.gmra.mxu0 %v2971_v0  ;;  %1400 = vmatmul.bf16.vlgmr.msrb.gmra.mxu2 %v2907_v1  ;;  %v3051_v0 = vor.u32 %v3654_v57, %v3050_v56  ;;  %v2915_v1 = vor.u32 %v3619_v59, %v2914_v58  ;;  %v3646_v56 = vld [vmem:[%s4304_s24 + $0x108] sm:$0xf0]  ;;  %v3677_v57 = vld [vmem:[%s4304_s24 + $0x204] sm:$0xf]  ;;  %v3160_v58 = vld [vmem:[%s4304_s24 + $0x224] sm:$0xf0] }
  0x79   : > { %1361 = vmatmul.bf16.gmra.mxu1 %v2975_v2  ;;  %v3055_v2 = vor.u32 %v3650_v60, %v3052_v61  ;;  %1588 = vmatpush.bf16.msra.mxu2 %v3740_v4  ;;  %v3642_v59 = vld [vmem:[%s4304_s24 + $0xec] sm:$0xf]  ;;  %v3024_v60 = vld [vmem:[%s4304_s24 + $0x10c] sm:$0xf0] }
  0x7a   : > { %1637 = vmatpush.bf16.msra.mxu3 %v3748_v5  ;;  %v3027_v4 = vor.u32 %v3642_v59, %v3024_v60  ;;  %1686 = vmatpush.bf16.msra.mxu0 %v3756_v31 }
  0x7b   : > { %1449 = vmatmul.bf16.vlgmr.msrb.gmra.mxu3 %v2911_v3  ;;  %v2919_v3 = vor.u32 %v3615_v62, %v2916_v63 }
  0x7d   : > { %1589 = vmatpush.bf16.msra.mxu2 %v3739_v6 }
  0x7e   : > { %1638 = vmatpush.bf16.msra.mxu3 %v3747_v7 }
  0x81   : > { %1590 = vmatpush.bf16.msra.mxu2 %v3738_v8 }
  0x82   : > { %1639 = vmatpush.bf16.msra.mxu3 %v3746_v17  ;;  %v3651_v17 = vld [vmem:[%s4304_s24 + $0x134] sm:$0xf] }
  0x88   : > { %1317 = vmatmul.bf16.gmra.mxu0 %v3007_v20  ;;  %1405 = vmatmul.bf16.gmra.mxu2 %v2943_v21  ;;  %v3737_v20 = vld [vmem:[#allocation5 + $0x1a0] sm:$0xff]  ;;  %v3091_v21 = vor.u32 %v3659_v13, %v3088_v14  ;;  %v3058_v13 = vld [vmem:[%s4304_s24 + $0x130] sm:$0xf]  ;;  %v3655_v14 = vld [vmem:[%s4304_s24 + $0x150] sm:$0xf0] }
  0x89   : > { %1366 = vmatmul.bf16.gmra.mxu1 %v3011_v22  ;;  %v2955_v22 = vor.u32 %v3624_v15, %v2952_v16  ;;  %1591 = vmatpush.bf16.msra.mxu2 %v3737_v20  ;;  %v2922_v15 = vld [vmem:[%s4304_s24 + $0x18] sm:$0xf]  ;;  %v3620_v16 = vld [vmem:[%s4304_s24 + $0x38] sm:$0xf0]  ;;  %v2924_v20 = vld [vmem:[%s4304_s24 + $0x3c] sm:$0xf0] }
  0x8b   : > { %1454 = vmatmul.bf16.gmra.mxu3 %v2947_v23  ;;  %v3745_v23 = vld [vmem:[#allocation5 + $0x1e0] sm:$0xff] }
  0x8c   : > { %1640 = vmatpush.bf16.msra.mxu3 %v3745_v23  ;;  %v3059_v23 = vor.u32 %v3655_v14, %v3058_v13  ;;  %v3638_v13 = vld [vmem:[%s4304_s24 + $0xc8] sm:$0xf0]  ;;  %v3669_v14 = vld [vmem:[%s4304_s24 + $0x1c4] sm:$0xf] }
  0x8d   : > { %1592 = vmatpush.bf16.msra.mxu2 %v3736_v24  ;;  %v2923_v24 = vor.u32 %v3620_v16, %v2922_v15  ;;  %v3132_v15 = vld [vmem:[%s4304_s24 + $0x1e4] sm:$0xf0]  ;;  %v3634_v16 = vld [vmem:[%s4304_s24 + $0xac] sm:$0xf] }
  0x90   : > { %1641 = vmatpush.bf16.msra.mxu3 %v3744_v25 }
  0x91   : > { %1593 = vmatpush.bf16.msra.mxu2 %v3735_v26 }
  0x94   : > { %1642 = vmatpush.bf16.msra.mxu3 %v3743_v27 }
  0x95   : > { %1594 = vmatpush.bf16.msra.mxu2 %v3734_v28 }
  0x98   : > { %1322 = vmatmul.bf16.gmra.mxu0 %v3043_v40  ;;  %1410 = vmatmul.bf16.gmra.mxu2 %v2979_v41  ;;  %v3733_v40 = vld [vmem:[#allocation5 + $0x180] sm:$0xff] }
  0x99   : > { %1371 = vmatmul.bf16.gmra.mxu1 %v3047_v42  ;;  %v3127_v42 = vor.u32 %v3668_v33, %v3124_v34  ;;  %1643 = vmatpush.bf16.msra.mxu3 %v3742_v37 }
  0x9a   : > { %1595 = vmatpush.bf16.msra.mxu2 %v3733_v40  ;;  %v3094_v40 = vld [vmem:[%s4304_s24 + $0x178] sm:$0xf] }
  0x9b   : > { %1459 = vmatmul.bf16.gmra.mxu3 %v2983_v43  ;;  %v2991_v43 = vor.u32 %v3633_v35, %v2988_v36  ;;  %v3755_v35 = vld [vmem:[#allocation5 + $0x230] sm:$0xff] }
  0x9c   : > { %1687 = vmatpush.bf16.msra.mxu0 %v3755_v35 }
  0x9d   : > { %1644 = vmatpush.bf16.msra.mxu3 %v3741_v45  ;;  %v3096_v45 = vld [vmem:[%s4304_s24 + $0x19c] sm:$0xf0] }
  0xa8   : > { %1327 = vmatmul.bf16.gmra.mxu0 %v3079_v52  ;;  %1415 = vmatmul.bf16.gmra.mxu2 %v3015_v53  ;;  %v3158_v53 = vld [vmem:[%s4304_s24 + $0x200] sm:$0xf] }
  0xa9   : > { %1376 = vmatmul.bf16.gmra.mxu1 %v3083_v54  ;;  %v3681_v54 = vld [vmem:[%s4304_s24 + $0x220] sm:$0xf0] }
  0xaa   : > { %v3159_v63 = vor.u32 %v3681_v54, %v3158_v53 }
  0xab   : > { %1464 = vmatmul.bf16.gmra.mxu3 %v3019_v55  ;;  %v3022_v55 = vld [vmem:[%s4304_s24 + $0xe8] sm:$0xf] }
  0xb8   : > { %1420 = vmatmul.bf16.gmra.mxu2 %v3051_v0  ;;  %1498 = vmatmul.bf16.vlgmr.msrb.gmra.mxu0 %v2915_v1  ;;  %v3023_v0 = vor.u32 %v3646_v56, %v3022_v55  ;;  %v3753_v55 = vld [vmem:[#allocation5 + $0x220] sm:$0xff] }
  0xb9   : > { %1547 = vmatmul.bf16.vlgmr.msrb.gmra.mxu1 %v2919_v3  ;;  %v3163_v3 = vor.u32 %v3677_v57, %v3160_v58 }
  0xbb   : > { %1469 = vmatmul.bf16.gmra.mxu3 %v3055_v2 }
  0xc8   : > { %1425 = vmatmul.bf16.gmra.mxu2 %v3087_v18  ;;  %1503 = vmatmul.bf16.gmra.mxu0 %v2951_v19  ;;  %v3060_v18 = vld [vmem:[%s4304_s24 + $0x154] sm:$0xf0]  ;;  %v3616_v19 = vld [vmem:[%s4304_s24 + $0x1c] sm:$0xf] }
  0xc9   : > { %1552 = vmatmul.bf16.gmra.mxu1 %v2955_v22  ;;  %v3063_v27 = vor.u32 %v3651_v17, %v3060_v18  ;;  %v2927_v28 = vor.u32 %v3616_v19, %v2924_v20  ;;  %v2996_v17 = vld [vmem:[%s4304_s24 + $0xcc] sm:$0xf0] }
  0xcb   : > { %1474 = vmatmul.bf16.gmra.mxu3 %v3091_v21 }
  0xd5   : > { %v1303_v41 = vpop.f32.mrf.mxu0 }
  0xd6   : > { %v1352_v44 = vpop.f32.mrf.mxu1 }
  0xd7   : > { %v4390_v46 = vadd.f32 %v1352_v44, %v1303_v41  ;;  %v3664_v41 = vld [vmem:[%s4304_s24 + $0x198] sm:$0xf0] }
  0xd8   : > { %1430 = vmatmul.bf16.gmra.mxu2 %v3123_v38  ;;  %1508 = vmatmul.bf16.gmra.mxu0 %v2987_v39  ;;  %v3754_v39 = vld [vmem:[#allocation5 + $0x228] sm:$0xff]  ;;  %v3660_v44 = vld [vmem:[%s4304_s24 + $0x17c] sm:$0xf]  ;;  %v3095_v53 = vor.u32 %v3664_v41, %v3094_v40  ;;  %v3030_v41 = vld [vmem:[%s4304_s24 + $0xf0] sm:$0xf] }
  0xd9   : > { %1557 = vmatmul.bf16.gmra.mxu1 %v2991_v43  ;;  %v3629_v43 = vld [vmem:[%s4304_s24 + $0x80] sm:$0xf0]  ;;  %1688 = vmatpush.bf16.msra.mxu0 %v3754_v39  ;;  %v3099_v57 = vor.u32 %v3660_v44, %v3096_v45  ;;  %v3166_v39 = vld [vmem:[%s4304_s24 + $0x208] sm:$0xf]  ;;  %v3682_v40 = vld [vmem:[%s4304_s24 + $0x228] sm:$0xf0] }
  0xda   : > { %v3168_v45 = vld [vmem:[%s4304_s24 + $0x22c] sm:$0xf0] }
  0xdb   : > { %1479 = vmatmul.bf16.gmra.mxu3 %v3127_v42  ;;  %v1333_v47 = vpop.f32.mrf.mxu2  ;;  %v2958_v42 = vld [vmem:[%s4304_s24 + $0x60] sm:$0xf] }
  0xdc   : > { %v2959_v54 = vor.u32 %v3629_v43, %v2958_v42  ;;  %v3647_v42 = vld [vmem:[%s4304_s24 + $0x110] sm:$0xf0]  ;;  %v3678_v43 = vld [vmem:[%s4304_s24 + $0x20c] sm:$0xf] }
  0xdd   : > { %v1305_v49 = vpop.f32.mrf.mxu0  ;;  %1689 = vmatpush.bf16.msra.mxu0 %v3753_v55  ;;  %v3171_v55 = vor.u32 %v3678_v43, %v3168_v45 }
  0xde   : > { %v1382_v48 = vpop.f32.mrf.mxu3  ;;  %v1354_v51 = vpop.f32.mrf.mxu1 }
  0xdf   : > { %v4392_v50 = vadd.f32 %v1382_v48, %v1333_v47  ;;  %v4394_v52 = vadd.f32 %v1354_v51, %v1305_v49  ;;  %v3625_v47 = vld [vmem:[%s4304_s24 + $0x64] sm:$0xf]  ;;  %v2960_v48 = vld [vmem:[%s4304_s24 + $0x84] sm:$0xf0] }
  0xe0   : > { %v2963_v58 = vor.u32 %v3625_v47, %v2960_v48  ;;  %v3643_v47 = vld [vmem:[%s4304_s24 + $0xf4] sm:$0xf]  ;;  %v3032_v48 = vld [vmem:[%s4304_s24 + $0x114] sm:$0xf0] }
  0xe3   : > { %v1335_v61 = vpop.f32.mrf.mxu2 }
  0xe5   : > { %v1308_v1 = vpop.f32.mrf.mxu0 }
  0xe6   : > { %v1384_v62 = vpop.f32.mrf.mxu3  ;;  %v1357_v5 = vpop.f32.mrf.mxu1 }
  0xe7   : > { %v4404_v2 = vadd.f32 %v1384_v62, %v1335_v61  ;;  %v4406_v6 = vadd.f32 %v1357_v5, %v1308_v1  ;;  %v3752_v62 = vld [vmem:[#allocation5 + $0x218] sm:$0xff]  ;;  %v3751_v1 = vld [vmem:[#allocation5 + $0x210] sm:$0xff] }
  0xe8   : > { %1435 = vmatmul.bf16.gmra.mxu2 %v3159_v63  ;;  %1513 = vmatmul.bf16.gmra.mxu0 %v3023_v0 }
  0xe9   : > { %1562 = vmatmul.bf16.gmra.mxu1 %v3027_v4  ;;  %1690 = vmatpush.bf16.msra.mxu0 %v3752_v62 }
  0xeb   : > { %1484 = vmatmul.bf16.gmra.mxu3 %v3163_v3  ;;  %v1338_v7 = vpop.f32.mrf.mxu2 }
  0xed   : > { %v1310_v9 = vpop.f32.mrf.mxu0  ;;  %1691 = vmatpush.bf16.msra.mxu0 %v3751_v1  ;;  %v3656_v1 = vld [vmem:[%s4304_s24 + $0x158] sm:$0xf0] }
  0xee   : > { %v1387_v8 = vpop.f32.mrf.mxu3  ;;  %v1359_v11 = vpop.f32.mrf.mxu1 }
  0xef   : > { %v4408_v10 = vadd.f32 %v1387_v8, %v1338_v7  ;;  %v4410_v12 = vadd.f32 %v1359_v11, %v1310_v9  ;;  %v3750_v7 = vld [vmem:[#allocation5 + $0x208] sm:$0xff]  ;;  %v3130_v8 = vld [vmem:[%s4304_s24 + $0x1c0] sm:$0xf]  ;;  %v3673_v9 = vld [vmem:[%s4304_s24 + $0x1e0] sm:$0xf0] }
  0xf0   : > { %v2994_v11 = vld [vmem:[%s4304_s24 + $0xa8] sm:$0xf]  ;;  %v3131_v20 = vor.u32 %v3673_v9, %v3130_v8  ;;  %v3621_v8 = vld [vmem:[%s4304_s24 + $0x40] sm:$0xf0] }
  0xf1   : > { %1692 = vmatpush.bf16.msra.mxu0 %v3750_v7  ;;  %v2930_v7 = vld [vmem:[%s4304_s24 + $0x20] sm:$0xf] }
  0xf3   : > { %v1340_v21 = vpop.f32.mrf.mxu2 }
  0xf5   : > { %v1313_v25 = vpop.f32.mrf.mxu0 }
  0xf6   : > { %v1389_v22 = vpop.f32.mrf.mxu3  ;;  %v1362_v29 = vpop.f32.mrf.mxu1 }
  0xf7   : > { %v4420_v26 = vadd.f32 %v1389_v22, %v1340_v21  ;;  %v4422_v30 = vadd.f32 %v1362_v29, %v1313_v25  ;;  %v2995_v21 = vor.u32 %v3638_v13, %v2994_v11  ;;  %v3749_v22 = vld [vmem:[#allocation5 + $0x200] sm:$0xff]  ;;  %v2999_v25 = vor.u32 %v3634_v16, %v2996_v17  ;;  %v3652_v11 = vld [vmem:[%s4304_s24 + $0x13c] sm:$0xf] }
  0xf8   : > { %1518 = vmatmul.bf16.gmra.mxu0 %v3059_v23  ;;  %1596 = vmatmul.bf16.vlgmr.msra.gmra.mxu2 %v2923_v24  ;;  %v3135_v24 = vor.u32 %v3669_v14, %v3132_v15  ;;  %v3068_v13 = vld [vmem:[%s4304_s24 + $0x15c] sm:$0xf0] }
  0xf9   : > { %1567 = vmatmul.bf16.gmra.mxu1 %v3063_v27  ;;  %1693 = vmatpush.bf16.msra.mxu0 %v3749_v22 }
  0xfb   : > { %1645 = vmatmul.bf16.vlgmr.msra.gmra.mxu3 %v2927_v28  ;;  %v1401_v32 = vpop.f32.mrf.mxu2 }
  0xfc   : > { %v1402_v33 = vadd.f32 %v1401_v32, %v4390_v46 }
  0xfd   : > { %v4425_v36 = vpop.f32.mrf.mxu0 }
  0xfe   : > { %v1450_v34 = vpop.f32.mrf.mxu3  ;;  %v4427_v37 = vpop.f32.mrf.mxu1 }
  0xff   : > { %v4429_v38 = vadd.f32 %v1450_v34, %v1402_v33  ;;  %v1365_v44 = vadd.f32 %v4427_v37, %v4425_v36 }
 0x103   : > { %v1403_v46 = vpop.f32.mrf.mxu2 }
 0x104   : > { %v1404_v49 = vadd.f32 %v1403_v46, %v4394_v52 }
 0x105   : > { %v1318_v56 = vpop.f32.mrf.mxu0 }
 0x106   : > { %v1452_v51 = vpop.f32.mrf.mxu3  ;;  %v1367_v59 = vpop.f32.mrf.mxu1 }
 0x107   : > { %v4440_v60 = vadd.f32 %v1452_v51, %v1404_v49  ;;  %v4442_v61 = vadd.f32 %v1367_v59, %v1318_v56  ;;  %v3167_v51 = vor.u32 %v3682_v40, %v3166_v39  ;;  %v3035_v56 = vor.u32 %v3643_v47, %v3032_v48  ;;  %v3104_v39 = vld [vmem:[%s4304_s24 + $0x1a4] sm:$0xf0] }
 0x108   : > { %1523 = vmatmul.bf16.gmra.mxu0 %v3095_v53  ;;  %1601 = vmatmul.bf16.gmra.mxu2 %v2959_v54  ;;  %v3031_v53 = vor.u32 %v3647_v42, %v3030_v41 }
 0x109   : > { %1572 = vmatmul.bf16.gmra.mxu1 %v3099_v57 }
 0x10b   : > { %1650 = vmatmul.bf16.gmra.mxu3 %v2963_v58  ;;  %v1406_v52 = vpop.f32.mrf.mxu2 }
 0x10c   : > { %v1407_v63 = vadd.f32 %v1406_v52, %v4406_v6 }
 0x10d   : > { %v4445_v3 = vpop.f32.mrf.mxu0 }
 0x10e   : > { %v1455_v0 = vpop.f32.mrf.mxu3  ;;  %v4447_v4 = vpop.f32.mrf.mxu1 }
 0x10f   : > { %v4449_v5 = vadd.f32 %v1455_v0, %v1407_v63  ;;  %v3066_v0 = vld [vmem:[%s4304_s24 + $0x138] sm:$0xf]  ;;  %v1370_v9 = vadd.f32 %v4447_v4, %v4445_v3 }
 0x110   : > { %v3067_v17 = vor.u32 %v3656_v1, %v3066_v0 }
 0x113   : > { %v1408_v6 = vpop.f32.mrf.mxu2 }
 0x114   : > { %v1409_v18 = vadd.f32 %v1408_v6, %v4410_v12 }
 0x115   : > { %v1323_v23 = vpop.f32.mrf.mxu0 }
 0x116   : > { %v1457_v19 = vpop.f32.mrf.mxu3  ;;  %v1372_v27 = vpop.f32.mrf.mxu1 }
 0x117   : > { %v4460_v28 = vadd.f32 %v1457_v19, %v1409_v18  ;;  %v1373_v29 = vadd.f32 %v1372_v27, %v1323_v23  ;;  %v3071_v18 = vor.u32 %v3652_v11, %v3068_v13  ;;  %v3665_v27 = vld [vmem:[%s4304_s24 + $0x1a0] sm:$0xf0]  ;;  %v3174_v13 = vld [vmem:[%s4304_s24 + $0x210] sm:$0xf] }
 0x118   : > { %1528 = vmatmul.bf16.gmra.mxu0 %v3131_v20  ;;  %1606 = vmatmul.bf16.gmra.mxu2 %v2995_v21 }
 0x119   : > { %1577 = vmatmul.bf16.gmra.mxu1 %v3135_v24 }
 0x11b   : > { %1655 = vmatmul.bf16.gmra.mxu3 %v2999_v25  ;;  %v1411_v12 = vpop.f32.mrf.mxu2  ;;  %v3102_v25 = vld [vmem:[%s4304_s24 + $0x180] sm:$0xf] }
 0x11c   : > { %v1412_v31 = vadd.f32 %v1411_v12, %v4422_v30  ;;  %v2966_v12 = vld [vmem:[%s4304_s24 + $0x68] sm:$0xf] }
 0x11d   : > { %v4463_v33 = vpop.f32.mrf.mxu0 }
 0x11e   : > { %v1460_v32 = vpop.f32.mrf.mxu3  ;;  %v4465_v34 = vpop.f32.mrf.mxu1 }
 0x11f   : > { %v4467_v35 = vadd.f32 %v1460_v32, %v1412_v31  ;;  %v3630_v31 = vld [vmem:[%s4304_s24 + $0x88] sm:$0xf0]  ;;  %v3661_v32 = vld [vmem:[%s4304_s24 + $0x184] sm:$0xf] }
 0x120   : > { %v2967_v41 = vor.u32 %v3630_v31, %v2966_v12 }
 0x123   : > { %v1413_v46 = vpop.f32.mrf.mxu2 }
 0x124   : > { %v1414_v30 = vadd.f32 %v1413_v46, %v1365_v44 }
 0x125   : > { %v1328_v54 = vpop.f32.mrf.mxu0 }
 0x126   : > { %v1462_v49 = vpop.f32.mrf.mxu3  ;;  %v1377_v57 = vpop.f32.mrf.mxu1 }
 0x127   : > { %v4479_v58 = vadd.f32 %v1462_v49, %v1414_v30  ;;  %v1378_v36 = vadd.f32 %v1377_v57, %v1328_v54  ;;  %v3138_v49 = vld [vmem:[%s4304_s24 + $0x1c8] sm:$0xf]  ;;  %v3639_v54 = vld [vmem:[%s4304_s24 + $0xd0] sm:$0xf0] }
 0x128   : > { %1533 = vmatmul.bf16.gmra.mxu0 %v3167_v51  ;;  %1611 = vmatmul.bf16.gmra.mxu2 %v3031_v53  ;;  %v3674_v51 = vld [vmem:[%s4304_s24 + $0x1e8] sm:$0xf0]  ;;  %v3002_v53 = vld [vmem:[%s4304_s24 + $0xb0] sm:$0xf] }
 0x129   : > { %1582 = vmatmul.bf16.gmra.mxu1 %v3171_v55  ;;  %v3670_v55 = vld [vmem:[%s4304_s24 + $0x1cc] sm:$0xf] }
 0x12b   : > { %1660 = vmatmul.bf16.gmra.mxu3 %v3035_v56  ;;  %v1416_v37 = vpop.f32.mrf.mxu2  ;;  %v3140_v56 = vld [vmem:[%s4304_s24 + $0x1ec] sm:$0xf0] }
 0x12c   : > { %v1417_v59 = vadd.f32 %v1416_v37, %v4442_v61  ;;  %v2931_v61 = vor.u32 %v3621_v8, %v2930_v7  ;;  %v3003_v37 = vor.u32 %v3639_v54, %v3002_v53 }
 0x12d   : > { %v4482_v52 = vpop.f32.mrf.mxu0 }
 0x12e   : > { %v1465_v62 = vpop.f32.mrf.mxu3 }
 0x12f   : > { %v4484_v63 = vadd.f32 %v1465_v62, %v1417_v59 }
 0x133   : > { %v1418_v14 = vpop.f32.mrf.mxu2 }
 0x134   : > { %v1419_v15 = vadd.f32 %v1418_v14, %v1370_v9  ;;  %v3683_v14 = vld [vmem:[%s4304_s24 + $0x230] sm:$0xf0] }
 0x135   : > { %v1499_v6 = vpop.f32.mrf.mxu0 }
 0x136   : > { %v1467_v16 = vpop.f32.mrf.mxu3  ;;  %v4497_v20 = vadd.f32 %v1499_v6, %v4429_v38 }
 0x137   : > { %v4494_v19 = vadd.f32 %v1467_v16, %v1419_v15  ;;  %v3038_v15 = vld [vmem:[%s4304_s24 + $0xf8] sm:$0xf]  ;;  %v3648_v16 = vld [vmem:[%s4304_s24 + $0x118] sm:$0xf0] }
 0x138   : > { %1616 = vmatmul.bf16.gmra.mxu2 %v3067_v17  ;;  %1694 = vmatmul.bf16.vlgmr.msra.gmra.mxu0 %v2931_v61  ;;  %v3679_v17 = vld [vmem:[%s4304_s24 + $0x214] sm:$0xf] }
 0x13b   : > { %1665 = vmatmul.bf16.gmra.mxu3 %v3071_v18  ;;  %v1421_v3 = vpop.f32.mrf.mxu2  ;;  %v3039_v18 = vor.u32 %v3648_v16, %v3038_v15 }
 0x13c   : > { %v1422_v4 = vadd.f32 %v1421_v3, %v1373_v29  ;;  %v3103_v29 = vor.u32 %v3665_v27, %v3102_v25 }
 0x13d   : > { %v1501_v22 = vpop.f32.mrf.mxu0 }
 0x13e   : > { %v1470_v21 = vpop.f32.mrf.mxu3  ;;  %v4502_v24 = vadd.f32 %v1501_v22, %v4440_v60  ;;  %v3107_v60 = vor.u32 %v3661_v32, %v3104_v39  ;;  %v3074_v32 = vld [vmem:[%s4304_s24 + $0x140] sm:$0xf]  ;;  %v3657_v39 = vld [vmem:[%s4304_s24 + $0x160] sm:$0xf0] }
 0x13f   : > { %v4499_v23 = vadd.f32 %v1470_v21, %v1422_v4 }
 0x143   : > { %v4510_v38 = vpop.f32.mrf.mxu2 }
 0x145   : > { %v1504_v42 = vpop.f32.mrf.mxu0 }
 0x146   : > { %v4512_v40 = vpop.f32.mrf.mxu3  ;;  %v4515_v43 = vadd.f32 %v1504_v42, %v4449_v5 }
 0x148   : > { %1621 = vmatmul.bf16.gmra.mxu2 %v3103_v29  ;;  %1699 = vmatmul.bf16.gmra.mxu0 %v2967_v41  ;;  %v3075_v29 = vor.u32 %v3657_v39, %v3074_v32  ;;  %v3522_v32 = vld [vmem:[#allocation7 + $0x80] sm:$0xf]  ;;  %v3770_v39 = vld [vmem:[#allocation7 + $0x8c] sm:$0xf0] }
 0x14b   : > { %1670 = vmatmul.bf16.gmra.mxu3 %v3107_v60  ;;  %v1426_v44 = vpop.f32.mrf.mxu2  ;;  %v3110_v60 = vld [vmem:[%s4304_s24 + $0x188] sm:$0xf] }
 0x14c   : > { %v1427_v45 = vadd.f32 %v1426_v44, %v1378_v36  ;;  %v3139_v36 = vor.u32 %v3674_v51, %v3138_v49  ;;  %v3666_v44 = vld [vmem:[%s4304_s24 + $0x1a8] sm:$0xf0]  ;;  %v3560_v49 = vld [vmem:[#allocation7 + $0xf0] sm:$0xf0]  ;;  %v3566_v51 = vld [vmem:[#allocation7 + $0xe8] sm:$0xf] }
 0x14d   : > { %v1506_v48 = vpop.f32.mrf.mxu0 }
 0x14e   : > { %v1475_v47 = vpop.f32.mrf.mxu3  ;;  %v4520_v30 = vadd.f32 %v1506_v48, %v4460_v28  ;;  %v3143_v28 = vor.u32 %v3670_v55, %v3140_v56  ;;  %v4569_v55 = vpop.f32.mrf.mxu1  ;;  %v3111_v56 = vor.u32 %v3666_v44, %v3110_v60  ;;  %v3524_v60 = vld [vmem:[#allocation7 + $0x90] sm:$0xf0]  ;;  %v3530_v44 = vld [vmem:[#allocation7 + $0x88] sm:$0xf] }
 0x14f   : > { %v4517_v46 = vadd.f32 %v1475_v47, %v1427_v45  ;;  %v3779_v45 = vld [vmem:[#allocation7 + $0xec] sm:$0xf0]  ;;  %v3778_v47 = vld [vmem:[#allocation7 + $0xe4] sm:$0xf] }
 0x150   : > { %v3563_v53 = vor.u32 %v3778_v47, %v3560_v49  ;;  %v3146_v49 = vld [vmem:[%s4304_s24 + $0x1d0] sm:$0xf] }
 0x152   : > { %1960 = vmatpush.bf16.msrb.mxu2 %v3563_v53  ;;  %v3767_v53 = vld [vmem:[#allocation7 + $0x6c] sm:$0xf0] }
 0x153   : > { %v4528_v5 = vpop.f32.mrf.mxu2 }
 0x155   : > { %v1509_v59 = vpop.f32.mrf.mxu0 }
 0x156   : > { %v4530_v57 = vpop.f32.mrf.mxu3  ;;  %v4533_v62 = vadd.f32 %v1509_v59, %v4467_v35  ;;  %v3176_v35 = vld [vmem:[%s4304_s24 + $0x234] sm:$0xf0]  ;;  %v3776_v59 = vld [vmem:[#allocation7 + $0xcc] sm:$0xf0] }
 0x157   : > { %v3179_v4 = vor.u32 %v3679_v17, %v3176_v35  ;;  %v3534_v17 = vld [vmem:[#allocation7 + $0xa0] sm:$0xf]  ;;  %v3773_v35 = vld [vmem:[#allocation7 + $0xac] sm:$0xf0] }
 0x158   : > { %1626 = vmatmul.bf16.gmra.mxu2 %v3139_v36  ;;  %1704 = vmatmul.bf16.gmra.mxu0 %v3003_v37  ;;  %v3546_v37 = vld [vmem:[#allocation7 + $0xc0] sm:$0xf] }
 0x15b   : > { %1675 = vmatmul.bf16.gmra.mxu3 %v3143_v28  ;;  %v1431_v0 = vpop.f32.mrf.mxu2  ;;  %v3775_v28 = vld [vmem:[#allocation7 + $0xc4] sm:$0xf] }
 0x15c   : > { %v1432_v1 = vadd.f32 %v1431_v0, %v4392_v50  ;;  %v3175_v50 = vor.u32 %v3683_v14, %v3174_v13  ;;  %v3777_v13 = vld [vmem:[#allocation7 + $0xd4] sm:$0xf0] }
 0x15d   : > { %v1511_v8 = vpop.f32.mrf.mxu0 }
 0x15e   : > { %v1480_v7 = vpop.f32.mrf.mxu3  ;;  %v4539_v11 = vadd.f32 %v1511_v8, %v4479_v58  ;;  %v3554_v8 = vld [vmem:[#allocation7 + $0xc8] sm:$0xf] }
 0x15f   : > { %v4536_v9 = vadd.f32 %v1480_v7, %v1432_v1  ;;  %v3547_v1 = vor.u32 %v3776_v59, %v3546_v37  ;;  %v3548_v7 = vld [vmem:[#allocation7 + $0xd0] sm:$0xf0]  ;;  %v3555_v15 = vor.u32 %v3777_v13, %v3554_v8  ;;  %v3518_v37 = vld [vmem:[#allocation7 + $0x68] sm:$0xf]  ;;  %v3768_v59 = vld [vmem:[#allocation7 + $0x74] sm:$0xf0] }
 0x160   : > { %v3551_v14 = vor.u32 %v3775_v28, %v3548_v7  ;;  %v3519_v7 = vor.u32 %v3768_v59, %v3518_v37  ;;  %v3482_v37 = vld [vmem:[#allocation7 + $0x8] sm:$0xf]  ;;  %v3759_v59 = vld [vmem:[#allocation7 + $0x14] sm:$0xf0] }
 0x162   : > { %1961 = vmatpush.bf16.msrb.mxu2 %v3551_v14  ;;  %v3498_v14 = vld [vmem:[#allocation7 + $0x40] sm:$0xf] }
 0x163   : > { %v4547_v61 = vpop.f32.mrf.mxu2 }
 0x165   : > { %v1514_v3 = vpop.f32.mrf.mxu0 }
 0x166   : > { %v4549_v6 = vpop.f32.mrf.mxu3  ;;  %v4552_v21 = vadd.f32 %v1514_v3, %v4484_v63  ;;  %v3536_v3 = vld [vmem:[#allocation7 + $0xb0] sm:$0xf0] }
 0x168   : > { %1631 = vmatmul.bf16.gmra.mxu2 %v3175_v50  ;;  %1709 = vmatmul.bf16.gmra.mxu0 %v3039_v18  ;;  %v3772_v50 = vld [vmem:[#allocation7 + $0xa4] sm:$0xf]  ;;  %v3535_v18 = vor.u32 %v3773_v35, %v3534_v17 }
 0x169   : > { %v3763_v17 = vld [vmem:[#allocation7 + $0x44] sm:$0xf] }
 0x16b   : > { %1680 = vmatmul.bf16.gmra.mxu3 %v3179_v4  ;;  %v1436_v58 = vpop.f32.mrf.mxu2  ;;  %v3542_v4 = vld [vmem:[#allocation7 + $0xa8] sm:$0xf] }
 0x16c   : > { %v1437_v22 = vadd.f32 %v1436_v58, %v4408_v10  ;;  %v3558_v10 = vld [vmem:[#allocation7 + $0xe0] sm:$0xf]  ;;  %v3539_v58 = vor.u32 %v3772_v50, %v3536_v3  ;;  %v3506_v3 = vld [vmem:[#allocation7 + $0x48] sm:$0xf] }
 0x16d   : > { %v1516_v27 = vpop.f32.mrf.mxu0  ;;  %v3559_v48 = vor.u32 %v3779_v45, %v3558_v10  ;;  %v3771_v10 = vld [vmem:[#allocation7 + $0x94] sm:$0xf0] }
 0x16e   : > { %v1485_v25 = vpop.f32.mrf.mxu3  ;;  %v4558_v31 = vadd.f32 %v1516_v27, %v4494_v19  ;;  %v3780_v19 = vld [vmem:[#allocation7 + $0xf4] sm:$0xf0]  ;;  %1962 = vmatpush.bf16.msrb.mxu2 %v3539_v58 }
 0x16f   : > { %v4555_v12 = vadd.f32 %v1485_v25, %v1437_v22  ;;  %v3567_v54 = vor.u32 %v3780_v19, %v3566_v51  ;;  %1911 = vmatpush.bf16.msra.mxu1 %v3559_v48  ;;  %v4578_v25 = vpop.f32.mrf.mxu1  ;;  %v3531_v48 = vor.u32 %v3771_v10, %v3530_v44  ;;  %v3675_v51 = vld [vmem:[%s4304_s24 + $0x1f0] sm:$0xf0]  ;;  %v3510_v19 = vld [vmem:[#allocation7 + $0x60] sm:$0xf]  ;;  %v3494_v10 = vld [vmem:[#allocation7 + $0x28] sm:$0xf] }
 0x170   : > { %v3147_v8 = vor.u32 %v3675_v51, %v3146_v49  ;;  %v3488_v44 = vld [vmem:[#allocation7 + $0x30] sm:$0xf0] }
 0x171   : > { %2009 = vmatpush.bf16.msrb.mxu3 %v3567_v54  ;;  %v3766_v54 = vld [vmem:[#allocation7 + $0x64] sm:$0xf] }
 0x173   : > { %1912 = vmatpush.bf16.msra.mxu1 %v3547_v1 }
 0x175   : > { %v1519_v63 = vpop.f32.mrf.mxu0  ;;  %2010 = vmatpush.bf16.msrb.mxu3 %v3555_v15  ;;  %v3764_v15 = vld [vmem:[#allocation7 + $0x4c] sm:$0xf0] }
 0x176   : > { %v4563_v41 = vadd.f32 %v1519_v63, %v4499_v23  ;;  %v4571_v23 = vpop.f32.mrf.mxu2  ;;  %v4576_v16 = vpop.f32.mrf.mxu3  ;;  %v3523_v63 = vor.u32 %v3770_v39, %v3522_v32  ;;  %v3499_v50 = vor.u32 %v3764_v15, %v3498_v14  ;;  %v3486_v39 = vld [vmem:[#allocation7 + $0x20] sm:$0xf]  ;;  %v3684_v14 = vld [vmem:[%s4304_s24 + $0x238] sm:$0xf0] }
 0x177   : > { %1913 = vmatpush.bf16.msra.mxu1 %v3535_v18  ;;  %v3500_v18 = vld [vmem:[#allocation7 + $0x50] sm:$0xf0] }
 0x178   : > { %1714 = vmatmul.bf16.gmra.mxu0 %v3075_v29  ;;  %v3769_v29 = vld [vmem:[#allocation7 + $0x84] sm:$0xf]  ;;  %v3503_v58 = vor.u32 %v3763_v17, %v3500_v18 }
 0x179   : > { %v3527_v47 = vor.u32 %v3769_v29, %v3524_v60  ;;  %v3761_v29 = vld [vmem:[#allocation7 + $0x2c] sm:$0xf0] }
 0x17a   : > { %v3487_v60 = vor.u32 %v3761_v29, %v3486_v39 }
 0x17b   : > { %1914 = vmatpush.bf16.msra.mxu1 %v3523_v63  ;;  %1963 = vmatpush.bf16.msrb.mxu2 %v3527_v47  ;;  %v3760_v63 = vld [vmem:[#allocation7 + $0x24] sm:$0xf] }
 0x17c   : > { %v3491_v47 = vor.u32 %v3760_v63, %v3488_v44 }
 0x17d   : > { %v4565_v42 = vpop.f32.mrf.mxu0 }
 0x17e   : > { %v4582_v45 = vpop.f32.mrf.mxu2  ;;  %v4586_v28 = vpop.f32.mrf.mxu3 }
 0x185   : > { %v1524_v36 = vpop.f32.mrf.mxu0 }
 0x186   : > { %v4574_v0 = vadd.f32 %v1524_v36, %v4517_v46  ;;  %v3774_v46 = vld [vmem:[#allocation7 + $0xb4] sm:$0xf0]  ;;  %v3512_v36 = vld [vmem:[#allocation7 + $0x70] sm:$0xf0]  ;;  %v1599_v32 = vpop.f32.mrf.mxu2  ;;  %v1648_v49 = vpop.f32.mrf.mxu3 }
 0x187   : > { %v3543_v22 = vor.u32 %v3774_v46, %v3542_v4  ;;  %v3515_v1 = vor.u32 %v3766_v54, %v3512_v36  ;;  %v3765_v4 = vld [vmem:[#allocation7 + $0x54] sm:$0xf0]  ;;  %v1550_v46 = vpop.f32.mrf.mxu1  ;;  %v3757_v54 = vld [vmem:[#allocation7 + $0x4] sm:$0xf]  ;;  %v3476_v36 = vld [vmem:[#allocation7 + $0x10] sm:$0xf0] }
 0x188   : > { %1719 = vmatmul.bf16.gmra.mxu0 %v3111_v56  ;;  %v3511_v56 = vor.u32 %v3767_v53, %v3510_v19  ;;  %v3474_v19 = vld [vmem:[#allocation7] sm:$0xf]  ;;  %v3758_v53 = vld [vmem:[#allocation7 + $0xc] sm:$0xf0]  ;;  %v1551_v44 = vadd.f32 %v1550_v46, %v4502_v24 }
 0x189   : > { %2011 = vmatpush.bf16.msrb.mxu3 %v3543_v22  ;;  %1964 = vmatpush.bf16.msrb.mxu2 %v3515_v1  ;;  %v3507_v22 = vor.u32 %v3765_v4, %v3506_v3  ;;  %v3479_v1 = vor.u32 %v3757_v54, %v3476_v36 }
 0x18a   : > { %1915 = vmatpush.bf16.msra.mxu1 %v3511_v56  ;;  %v3475_v56 = vor.u32 %v3758_v53, %v3474_v19 }
 0x18d   : > { %v4580_v27 = vpop.f32.mrf.mxu0  ;;  %2012 = vmatpush.bf16.msrb.mxu3 %v3531_v48  ;;  %1965 = vmatpush.bf16.msrb.mxu2 %v3503_v58 }
 0x18e   : > { %1916 = vmatpush.bf16.msra.mxu1 %v3499_v50  ;;  %v1602_v15 = vpop.f32.mrf.mxu2  ;;  %v1651_v3 = vpop.f32.mrf.mxu3 }
 0x191   : > { %2013 = vmatpush.bf16.msrb.mxu3 %v3519_v7  ;;  %1966 = vmatpush.bf16.msrb.mxu2 %v3491_v47  ;;  %v3483_v7 = vor.u32 %v3759_v59, %v3482_v37  ;;  %v1600_v47 = vadd.f32 %v1599_v32, %v1551_v44 }
 0x192   : > { %1917 = vmatpush.bf16.msra.mxu1 %v3487_v60  ;;  %v1549_v60 = vadd.f32 %v4578_v25, %v4497_v20 }
 0x193   : > { %v1649_v19 = vadd.f32 %v1648_v49, %v1600_v47 }
 0x195   : > { %v1529_v13 = vpop.f32.mrf.mxu0  ;;  %2014 = vmatpush.bf16.msrb.mxu3 %v3507_v22  ;;  %1967 = vmatpush.bf16.msrb.mxu2 %v3479_v1 }
 0x196   : > { %v4589_v35 = vadd.f32 %v1529_v13, %v4536_v9  ;;  %v3762_v9 = vld [vmem:[#allocation7 + $0x34] sm:$0xf0]  ;;  %1918 = vmatpush.bf16.msra.mxu1 %v3475_v56  ;;  %v1604_v58 = vpop.f32.mrf.mxu2  ;;  %v1653_v39 = vpop.f32.mrf.mxu3 }
 0x197   : > { %v3495_v48 = vor.u32 %v3762_v9, %v3494_v10  ;;  %v3182_v13 = vld [vmem:[%s4304_s24 + $0x218] sm:$0xf]  ;;  %v1598_v9 = vadd.f32 %v4582_v45, %v1549_v60 }
 0x198   : > { %1724 = vmatmul.bf16.gmra.mxu0 %v3147_v8  ;;  %v1553_v8 = vpop.f32.mrf.mxu1  ;;  %v3183_v17 = vor.u32 %v3684_v14, %v3182_v13 }
 0x199   : > { %2015 = vmatpush.bf16.msrb.mxu3 %v3495_v48  ;;  %v1647_v48 = vadd.f32 %v4586_v28, %v1598_v9  ;;  %v1554_v24 = vadd.f32 %v1553_v8, %v4515_v43 }
 0x19b   : > { %v1603_v46 = vadd.f32 %v1602_v15, %v1554_v24 }
 0x19d   : > { %v4591_v51 = vpop.f32.mrf.mxu0  ;;  %2016 = vmatpush.bf16.msrb.mxu3 %v3483_v7  ;;  %v1652_v49 = vadd.f32 %v1651_v3, %v1603_v46 }
 0x19e   : > { %v1607_v10 = vpop.f32.mrf.mxu2 }
 0x1a0   : > { %v1555_v4 = vpop.f32.mrf.mxu1 }
 0x1a1   : > { %v1556_v45 = vadd.f32 %v1555_v4, %v4520_v30 }
 0x1a3   : > { %v1605_v32 = vadd.f32 %v1604_v58, %v1556_v45 }
 0x1a5   : > { %v1534_v50 = vpop.f32.mrf.mxu0  ;;  %v1654_v7 = vadd.f32 %v1653_v39, %v1605_v32 }
 0x1a6   : > { %v4596_v18 = vadd.f32 %v1534_v50, %v4555_v12  ;;  %v1656_v12 = vpop.f32.mrf.mxu3  ;;  %v1609_v59 = vpop.f32.mrf.mxu2 }
 0x1a8   : > { %1729 = vmatmul.bf16.gmra.mxu0 %v3183_v17  ;;  %v1558_v29 = vpop.f32.mrf.mxu1 }
 0x1a9   : > { %v1559_v43 = vadd.f32 %v1558_v29, %v4533_v62 }
 0x1ab   : > { %v1608_v8 = vadd.f32 %v1607_v10, %v1559_v43 }
 0x1ad   : > { %v4598_v22 = vpop.f32.mrf.mxu0  ;;  %v1657_v3 = vadd.f32 %v1656_v12, %v1608_v8 }
 0x1ae   : > { %v1658_v20 = vpop.f32.mrf.mxu3  ;;  %v1612_v28 = vpop.f32.mrf.mxu2 }
 0x1b0   : > { %v1560_v36 = vpop.f32.mrf.mxu1 }
 0x1b1   : > { %v1561_v30 = vadd.f32 %v1560_v36, %v4539_v11 }
 0x1b3   : > { %v1610_v15 = vadd.f32 %v1609_v59, %v1561_v30  ;;  %v1375_v59 = vadd.f32 %v4465_v34, %v4463_v33 }
 0x1b5   : > { %v1695_v63 = vpop.f32.mrf.mxu0  ;;  %v1659_v58 = vadd.f32 %v1658_v20, %v1610_v15  ;;  %v1424_v20 = vadd.f32 %v4510_v38, %v1375_v59 }
 0x1b6   : > { %v1696_v54 = vadd.f32 %v1695_v63, %v1647_v48  ;;  %v1661_v50 = vpop.f32.mrf.mxu3  ;;  %v1614_v44 = vpop.f32.mrf.mxu2 }
 0x1b8   : > { %v1563_v1 = vpop.f32.mrf.mxu1 }
 0x1b9   : > { %v1564_v62 = vadd.f32 %v1563_v1, %v4552_v21 }
 0x1bb   : > { %v1613_v10 = vadd.f32 %v1612_v28, %v1564_v62 }
 0x1bd   : > { %v1697_v53 = vpop.f32.mrf.mxu0 }
 0x1be   : > { %v1698_v56 = vadd.f32 %v1697_v53, %v1649_v19  ;;  %v1663_v4 = vpop.f32.mrf.mxu3  ;;  %v1617_v53 = vpop.f32.mrf.mxu2 }
 0x1c0   : > { %v1735_v37 = vpack.c.bf16 %v1698_v56, %v1696_v54  ;;  %v1565_v60 = vpop.f32.mrf.mxu1 }
 0x1c1   : > { %v1566_v11 = vadd.f32 %v1565_v60, %v4558_v31 }
 0x1c2   : > { %1919 = vmatmul.bf16.vlgmr.msra.gmra.mxu1 %v1735_v37  ;;  %1968 = vmatmul.bf16.vlgmr.msrb.gmra.mxu2 %v1735_v37 }
 0x1c3   : > { %2017 = vmatmul.bf16.vlgmr.msrb.gmra.mxu3 %v1735_v37  ;;  %v1615_v36 = vadd.f32 %v1614_v44, %v1566_v11 }
 0x1c5   : > { %v1700_v25 = vpop.f32.mrf.mxu0  ;;  %v1664_v24 = vadd.f32 %v1663_v4, %v1615_v36 }
 0x1c6   : > { %v1701_v14 = vadd.f32 %v1700_v25, %v1652_v49  ;;  %v1666_v56 = vpop.f32.mrf.mxu3  ;;  %v1619_v12 = vpop.f32.mrf.mxu2  ;;  %v1662_v25 = vadd.f32 %v1661_v50, %v1613_v10  ;;  %v1380_v50 = vadd.f32 %v4569_v55, %v4482_v52 }
 0x1c8   : > { %v1568_v39 = vpop.f32.mrf.mxu1 }
 0x1c9   : > { %v1569_v33 = vadd.f32 %v1568_v39, %v4563_v41 }
 0x1cd   : > { %v1702_v13 = vpop.f32.mrf.mxu0 }
 0x1ce   : > { %v1703_v17 = vadd.f32 %v1702_v13, %v1654_v7  ;;  %v1668_v45 = vpop.f32.mrf.mxu3  ;;  %v1473_v7 = vadd.f32 %v4512_v40, %v1424_v20  ;;  %v1622_v28 = vpop.f32.mrf.mxu2  ;;  %v1429_v40 = vadd.f32 %v4528_v5, %v1380_v50 }
 0x1d0   : > { %v1736_v63 = vpack.c.bf16 %v1703_v17, %v1701_v14  ;;  %v1570_v29 = vpop.f32.mrf.mxu1  ;;  %v1522_v31 = vadd.f32 %v4565_v42, %v1473_v7  ;;  %v1618_v14 = vadd.f32 %v1617_v53, %v1569_v33  ;;  %v1478_v8 = vadd.f32 %v4530_v57, %v1429_v40 }
 0x1d2   : > { %1924 = vmatmul.bf16.gmra.mxu1 %v1736_v63  ;;  %1973 = vmatmul.bf16.gmra.mxu2 %v1736_v63  ;;  %v1571_v34 = vadd.f32 %v1570_v29, %v1522_v31  ;;  %v1667_v60 = vadd.f32 %v1666_v56, %v1618_v14  ;;  %v1527_v4 = vadd.f32 %v4580_v27, %v1478_v8 }
 0x1d3   : > { %2022 = vmatmul.bf16.gmra.mxu3 %v1736_v63 }
 0x1d4   : > { %v1620_v17 = vadd.f32 %v1619_v12, %v1571_v34 }
 0x1d5   : > { %v1705_v9 = vpop.f32.mrf.mxu0 }
 0x1d6   : > { %v1706_v48 = vadd.f32 %v1705_v9, %v1657_v3  ;;  %v1671_v38 = vpop.f32.mrf.mxu3  ;;  %v1669_v44 = vadd.f32 %v1668_v45, %v1620_v17  ;;  %v1624_v42 = vpop.f32.mrf.mxu2 }
 0x1d8   : > { %v1573_v1 = vpop.f32.mrf.mxu1 }
 0x1d9   : > { %v1574_v55 = vadd.f32 %v1573_v1, %v4574_v0 }
 0x1db   : > { %v1623_v39 = vadd.f32 %v1622_v28, %v1574_v55 }
 0x1dd   : > { %v1707_v47 = vpop.f32.mrf.mxu0  ;;  %v1672_v57 = vadd.f32 %v1671_v38, %v1623_v39 }
 0x1de   : > { %v1708_v19 = vadd.f32 %v1707_v47, %v1659_v58  ;;  %v1673_v41 = vpop.f32.mrf.mxu3  ;;  %v1627_v58 = vpop.f32.mrf.mxu2 }
 0x1e0   : > { %v1737_v54 = vpack.c.bf16 %v1708_v19, %v1706_v48  ;;  %v1575_v63 = vpop.f32.mrf.mxu1  ;;  %v1434_v19 = vadd.f32 %v4547_v61, %v4404_v2 }
 0x1e1   : > { %v1576_v5 = vadd.f32 %v1575_v63, %v1527_v4 }
 0x1e2   : > { %1929 = vmatmul.bf16.gmra.mxu1 %v1737_v54  ;;  %1978 = vmatmul.bf16.gmra.mxu2 %v1737_v54  ;;  %v1483_v62 = vadd.f32 %v4549_v6, %v1434_v19 }
 0x1e3   : > { %2027 = vmatmul.bf16.gmra.mxu3 %v1737_v54  ;;  %v1625_v47 = vadd.f32 %v1624_v42, %v1576_v5 }
 0x1e4   : > { %v1532_v0 = vadd.f32 %v4591_v51, %v1483_v62 }
 0x1e5   : > { %v1710_v37 = vpop.f32.mrf.mxu0  ;;  %v1674_v53 = vadd.f32 %v1673_v41, %v1625_v47 }
 0x1e6   : > { %v1711_v32 = vadd.f32 %v1710_v37, %v1662_v25  ;;  %v1676_v48 = vpop.f32.mrf.mxu3  ;;  %v1629_v29 = vpop.f32.mrf.mxu2 }
 0x1e8   : > { %v1578_v3 = vpop.f32.mrf.mxu1 }
 0x1e9   : > { %v1579_v12 = vadd.f32 %v1578_v3, %v4589_v35 }
 0x1eb   : > { %v1628_v61 = vadd.f32 %v1627_v58, %v1579_v12 }
 0x1ed   : > { %v1712_v46 = vpop.f32.mrf.mxu0  ;;  %v1677_v6 = vadd.f32 %v1676_v48, %v1628_v61 }
 0x1ee   : > { %v1713_v49 = vadd.f32 %v1712_v46, %v1664_v24  ;;  %v1678_v10 = vpop.f32.mrf.mxu3  ;;  %v1632_v25 = vpop.f32.mrf.mxu2  ;;  %v1439_v24 = vadd.f32 %v4571_v23, %v4420_v26 }
 0x1f0   : > { %v1738_v21 = vpack.c.bf16 %v1713_v49, %v1711_v32  ;;  %v1580_v37 = vpop.f32.mrf.mxu1  ;;  %v1488_v7 = vadd.f32 %v4576_v16, %v1439_v24 }
 0x1f1   : > { %v1581_v2 = vadd.f32 %v1580_v37, %v1532_v0 }
 0x1f2   : > { %1934 = vmatmul.bf16.gmra.mxu1 %v1738_v21  ;;  %1983 = vmatmul.bf16.gmra.mxu2 %v1738_v21  ;;  %v1537_v1 = vadd.f32 %v4598_v22, %v1488_v7  ;;  %v4633_v22 = vld [vmem:[#allocation8] sm:$0x7] }
 0x1f3   : > { %2032 = vmatmul.bf16.gmra.mxu3 %v1738_v21  ;;  %v1630_v59 = vadd.f32 %v1629_v29, %v1581_v2 }
 0x1f5   : > { %v1715_v13 = vpop.f32.mrf.mxu0  ;;  %v1679_v45 = vadd.f32 %v1678_v10, %v1630_v59 }
 0x1f6   : > { %v1716_v43 = vadd.f32 %v1715_v13, %v1667_v60  ;;  %v1681_v49 = vpop.f32.mrf.mxu3  ;;  %v1634_v31 = vpop.f32.mrf.mxu2  ;;  %v4636_v60 = vperm.slane %v4633_v22, 1 }
 0x1f8   : > { %v1583_v20 = vpop.f32.mrf.mxu1 }
 0x1f9   : > { %v1584_v13 = vadd.f32 %v1583_v20, %v4596_v18 }
 0x1fb   : > { %v1633_v23 = vadd.f32 %v1632_v25, %v1584_v13 }
 0x1fd   : > { %v1717_v9 = vpop.f32.mrf.mxu0  ;;  %v1682_v38 = vadd.f32 %v1681_v49, %v1633_v23 }
 0x1fe   : > { %v1718_v30 = vadd.f32 %v1717_v9, %v1669_v44  ;;  %v1683_v34 = vpop.f32.mrf.mxu3 }
 0x200   : > { %v1739_v15 = vpack.c.bf16 %v1718_v30, %v1716_v43  ;;  %v1585_v35 = vpop.f32.mrf.mxu1 }
 0x201   : > { %v1586_v26 = vadd.f32 %v1585_v35, %v1537_v1 }
 0x202   : > { %1939 = vmatmul.bf16.gmra.mxu1 %v1739_v15  ;;  %1988 = vmatmul.bf16.gmra.mxu2 %v1739_v15 }
 0x203   : > { %2037 = vmatmul.bf16.gmra.mxu3 %v1739_v15  ;;  %v1635_v33 = vadd.f32 %v1634_v31, %v1586_v26 }
 0x205   : > { %v1720_v52 = vpop.f32.mrf.mxu0  ;;  %v1684_v14 = vadd.f32 %v1683_v34, %v1635_v33 }
 0x206   : > { %v1721_v56 = vadd.f32 %v1720_v52, %v1672_v57 }
 0x20d   : > { %v1722_v54 = vpop.f32.mrf.mxu0 }
 0x20e   : > { %v1723_v27 = vadd.f32 %v1722_v54, %v1674_v53 }
 0x210   : > { %v1740_v11 = vpack.c.bf16 %v1723_v27, %v1721_v56  ;;  %v4651_v56 = vperm.slane %v4633_v22, 2 }
 0x212   : > { %1944 = vmatmul.bf16.gmra.mxu1 %v1740_v11  ;;  %1993 = vmatmul.bf16.gmra.mxu2 %v1740_v11 }
 0x213   : > { %2042 = vmatmul.bf16.gmra.mxu3 %v1740_v11 }
 0x215   : > { %v1725_v36 = vpop.f32.mrf.mxu0 }
 0x216   : > { %v1726_v32 = vadd.f32 %v1725_v36, %v1677_v6 }
 0x21d   : > { %v1727_v46 = vpop.f32.mrf.mxu0 }
 0x21e   : > { %v1728_v51 = vadd.f32 %v1727_v46, %v1679_v45 }
 0x220   : > { %v1741_v21 = vpack.c.bf16 %v1728_v51, %v1726_v32 }
 0x222   : > { %1949 = vmatmul.bf16.gmra.mxu1 %v1741_v21  ;;  %1998 = vmatmul.bf16.gmra.mxu2 %v1741_v21 }
 0x223   : > { %2047 = vmatmul.bf16.gmra.mxu3 %v1741_v21 }
 0x225   : > { %v1730_v28 = vpop.f32.mrf.mxu0 }
 0x226   : > { %v1731_v50 = vadd.f32 %v1730_v28, %v1682_v38 }
 0x22d   : > { %v1732_v17 = vpop.f32.mrf.mxu0 }
 0x22e   : > { %v1733_v16 = vadd.f32 %v1732_v17, %v1684_v14 }
 0x230   : > { %v1742_v63 = vpack.c.bf16 %v1733_v16, %v1731_v50 }
 0x232   : > { %1954 = vmatmul.bf16.gmra.mxu1 %v1742_v63  ;;  %2003 = vmatmul.bf16.gmra.mxu2 %v1742_v63 }
 0x233   : > { %2052 = vmatmul.bf16.gmra.mxu3 %v1742_v63 }
 0x23f   : > { %v4646_v48 = vpop.f32.mrf.mxu1 }
 0x245   : > { %v1969_v40 = vpop.f32.mrf.mxu2 }
 0x246   : > { %v2018_v18 = vpop.f32.mrf.mxu3  ;;  %v1970_v44 = vadd.f32 %v1969_v40, %v4636_v60 }
 0x247   : > { %v4648_v54 = vpop.f32.mrf.mxu1  ;;  %v2019_v38 = vadd.f32 %v2018_v18, %v4651_v56 }
 0x248   : > { %v2074_v9 = vpack.c.bf16 %v1970_v44, %v1970_v44 }
 0x24a   : > { %v4640_v15 = vunpack.c.l.b16 %v2074_v9 }
 0x24d   : > { %v1971_v42 = vpop.f32.mrf.mxu2 }
 0x24e   : > { %v1972_v43 = vadd.f32 %v1971_v42, %v4636_v60  ;;  %v2020_v30 = vpop.f32.mrf.mxu3 }
 0x24f   : > { %v4661_v6 = vpop.f32.mrf.mxu1  ;;  %v2021_v31 = vadd.f32 %v2020_v30, %v4651_v56  ;;  %v2090_v30 = vpack.c.bf16 %v2019_v38, %v2019_v38 }
 0x250   : > { %v2075_v8 = vpack.c.bf16 %v1972_v43, %v1972_v43 }
 0x251   : > { %v2091_v63 = vpack.c.bf16 %v2021_v31, %v2021_v31 }
 0x252   : > { %v4642_v41 = vunpack.c.l.b16 %v2075_v8 }
 0x254   : > { %v2146_v4 = vpack.c.b16 %v4642_v41, %v4640_v15 }
 0x255   : > { %v1974_v3 = vpop.f32.mrf.mxu2 }
 0x256   : > { %v2023_v52 = vpop.f32.mrf.mxu3  ;;  %v1975_v42 = vadd.f32 %v1974_v3, %v4636_v60  ;;  %v2481_v3 = vunpack.c.l.b16 %v2090_v30 }
 0x257   : > { %v2024_v51 = vadd.f32 %v2023_v52, %v4651_v56  ;;  %v1927_v52 = vpop.f32.mrf.mxu1 }
 0x259   : > { %v2092_v14 = vpack.c.bf16 %v2024_v51, %v2024_v51 }
 0x25b   : > { %v2483_v8 = vunpack.c.l.b16 %v2092_v14 }
 0x25d   : > { %v1976_v55 = vpop.f32.mrf.mxu2 }
 0x25e   : > { %v2025_v5 = vpop.f32.mrf.mxu3  ;;  %v1977_v50 = vadd.f32 %v1976_v55, %v4636_v60 }
 0x25f   : > { %v2026_v20 = vadd.f32 %v2025_v5, %v4651_v56 }
 0x260   : > { %v2077_v5 = vpack.c.bf16 %v1977_v50, %v1977_v50 }
 0x261   : > { %v2093_v28 = vpack.c.bf16 %v2026_v20, %v2026_v20 }
 0x263   : > { %v2484_v40 = vunpack.c.l.b16 %v2093_v28 }
 0x265   : > { %v1979_v58 = vpop.f32.mrf.mxu2 }
 0x266   : > { %v2028_v39 = vpop.f32.mrf.mxu3  ;;  %v1980_v45 = vadd.f32 %v1979_v58, %v4636_v60  ;;  %v2482_v58 = vunpack.c.l.b16 %v2091_v63 }
 0x267   : > { %v2029_v36 = vadd.f32 %v2028_v39, %v4651_v56  ;;  %v2490_v39 = vpack.c.b16 %v2484_v40, %v2483_v8 }
 0x268   : > { %v2078_v33 = vpack.c.bf16 %v1980_v45, %v1980_v45 }
 0x269   : > { %v2094_v49 = vpack.c.bf16 %v2029_v36, %v2029_v36 }
 0x26a   : > { %v2142_v9 = vunpack.c.l.b16 %v2078_v33 }
 0x26b   : > { %v2485_v17 = vunpack.c.l.b16 %v2094_v49 }
 0x26d   : > { %v1981_v47 = vpop.f32.mrf.mxu2 }
 0x26e   : > { %v2030_v19 = vpop.f32.mrf.mxu3  ;;  %v1982_v61 = vadd.f32 %v1981_v47, %v4636_v60 }
 0x26f   : > { %v2031_v62 = vadd.f32 %v2030_v19, %v4651_v56  ;;  %v2076_v19 = vpack.c.bf16 %v1975_v42, %v1975_v42 }
 0x270   : > { %v2079_v1 = vpack.c.bf16 %v1982_v61, %v1982_v61  ;;  %v1930_v61 = vpop.f32.mrf.mxu1 }
 0x271   : > { %v2095_v25 = vpack.c.bf16 %v2031_v62, %v2031_v62  ;;  %v2489_v62 = vpack.c.b16 %v2482_v58, %v2481_v3 }
 0x272   : > { %v2143_v16 = vunpack.c.l.b16 %v2079_v1 }
 0x273   : > { %v2486_v13 = vunpack.c.l.b16 %v2095_v25 }
 0x274   : > { %v2148_v18 = vpack.c.b16 %v2143_v16, %v2142_v9 }
 0x275   : > { %v1984_v57 = vpop.f32.mrf.mxu2  ;;  %v2491_v44 = vpack.c.b16 %v2486_v13, %v2485_v17 }
 0x276   : > { %v2033_v53 = vpop.f32.mrf.mxu3  ;;  %v1985_v27 = vadd.f32 %v1984_v57, %v4636_v60 }
 0x277   : > { %v2034_v37 = vadd.f32 %v2033_v53, %v4651_v56 }
 0x278   : > { %v2080_v29 = vpack.c.bf16 %v1985_v27, %v1985_v27  ;;  %v2141_v27 = vunpack.c.l.b16 %v2077_v5  ;;  %v1932_v51 = vpop.f32.mrf.mxu1 }
 0x279   : > { %v2096_v12 = vpack.c.bf16 %v2034_v37, %v2034_v37 }
 0x27a   : > { %v2144_v46 = vunpack.c.l.b16 %v2080_v29 }
 0x27b   : > { %v2487_v7 = vunpack.c.l.b16 %v2096_v12  ;;  %v4682_v12 = vperm.slane %v4633_v22, 0 }
 0x27d   : > { %v1986_v11 = vpop.f32.mrf.mxu2  ;;  %v1923_v20 = vadd.f32 %v4648_v54, %v4682_v12  ;;  %v1921_v25 = vadd.f32 %v4646_v48, %v4682_v12  ;;  %v1928_v54 = vadd.f32 %v1927_v52, %v4682_v12  ;;  %v1926_v48 = vadd.f32 %v4661_v6, %v4682_v12 }
 0x27e   : > { %v1987_v0 = vadd.f32 %v1986_v11, %v4636_v60  ;;  %v2035_v10 = vpop.f32.mrf.mxu3  ;;  %v2140_v11 = vunpack.c.l.b16 %v2076_v19  ;;  %v1933_v38 = vadd.f32 %v1932_v51, %v4682_v12  ;;  %v1931_v17 = vadd.f32 %v1930_v61, %v4682_v12 }
 0x27f   : > { %v2036_v2 = vadd.f32 %v2035_v10, %v4651_v56  ;;  %v2058_v45 = vpack.c.bf16 %v1921_v25, %v1921_v25  ;;  %v2061_v31 = vpack.c.bf16 %v1928_v54, %v1928_v54  ;;  %v2060_v28 = vpack.c.bf16 %v1926_v48, %v1926_v48 }
 0x280   : > { %v2081_v59 = vpack.c.bf16 %v1987_v0, %v1987_v0  ;;  %v2147_v10 = vpack.c.b16 %v2141_v27, %v2140_v11  ;;  %v2063_v50 = vpack.c.bf16 %v1933_v38, %v1933_v38  ;;  %v2062_v63 = vpack.c.bf16 %v1931_v17, %v1931_v17 }
 0x281   : > { %v2097_v24 = vpack.c.bf16 %v2036_v2, %v2036_v2  ;;  %v2114_v49 = vunpack.c.l.b16 %v2058_v45  ;;  %v2116_v15 = vunpack.c.l.b16 %v2060_v28 }
 0x282   : > { %v2145_v32 = vunpack.c.l.b16 %v2081_v59  ;;  %v2119_v42 = vunpack.c.l.b16 %v2063_v50  ;;  %v2118_v58 = vunpack.c.l.b16 %v2062_v63 }
 0x283   : > { %v2488_v21 = vunpack.c.l.b16 %v2097_v24  ;;  %v2059_v24 = vpack.c.bf16 %v1923_v20, %v1923_v20 }
 0x284   : > { %v2149_v35 = vpack.c.b16 %v2145_v32, %v2144_v46 }
 0x285   : > { %v2492_v26 = vpack.c.b16 %v2488_v21, %v2487_v7  ;;  %v1989_v23 = vpop.f32.mrf.mxu2  ;;  %v2115_v22 = vunpack.c.l.b16 %v2059_v24 }
 0x286   : > { %v4666_v34 = vpop.f32.mrf.mxu3  ;;  %2158 = vmatpush.bf16.xpose.msrb.mxu1 %v2149_v35  ;;  %v1990_v43 = vadd.f32 %v1989_v23, %v4636_v60  ;;  %v1935_v35 = vpop.f32.mrf.mxu1  ;;  %v2117_v23 = vunpack.c.l.b16 %v2061_v31 }
 0x287   : > { %2513 = vmatpush.bf16.msra.mxu2 %v2492_v26  ;;  %v2122_v7 = vpack.c.b16 %v2115_v22, %v2114_v49 }
 0x288   : > { %v2082_v55 = vpack.c.bf16 %v1990_v43, %v1990_v43  ;;  %v2123_v41 = vpack.c.b16 %v2117_v23, %v2116_v15 }
 0x28a   : > { %v4675_v29 = vunpack.c.l.b16 %v2082_v55 }
 0x28b   : > { %2514 = vmatpush.bf16.msra.mxu2 %v2491_v44 }
 0x28d   : > { %v1991_v47 = vpop.f32.mrf.mxu2 }
 0x28e   : > { %v1992_v57 = vadd.f32 %v1991_v47, %v4636_v60  ;;  %v4673_v53 = vpop.f32.mrf.mxu3  ;;  %2159 = vmatpush.bf16.xpose.msrb.mxu1 %v2148_v18 }
 0x28f   : > { %2515 = vmatpush.bf16.msra.mxu2 %v2490_v39  ;;  %v2041_v45 = vadd.f32 %v4673_v53, %v4651_v56  ;;  %v1936_v53 = vadd.f32 %v1935_v35, %v4682_v12 }
 0x290   : > { %v2083_v37 = vpack.c.bf16 %v1992_v57, %v1992_v57 }
 0x291   : > { %v2099_v28 = vpack.c.bf16 %v2041_v45, %v2041_v45  ;;  %v2064_v38 = vpack.c.bf16 %v1936_v53, %v1936_v53 }
 0x292   : > { %v4677_v0 = vunpack.c.l.b16 %v2083_v37 }
 0x293   : > { %2516 = vmatpush.bf16.msra.mxu2 %v2489_v62  ;;  %v2124_v62 = vpack.c.b16 %v2119_v42, %v2118_v58 }
 0x294   : > { %v2223_v36 = vpack.c.b16 %v4677_v0, %v4675_v29 }
 0x295   : > { %v4684_v2 = vpop.f32.mrf.mxu2 }
 0x296   : > { %v2043_v59 = vpop.f32.mrf.mxu3  ;;  %2160 = vmatpush.bf16.xpose.msrb.mxu1 %v2147_v10  ;;  %v1995_v23 = vadd.f32 %v4684_v2, %v4636_v60 }
 0x297   : > { %v2044_v11 = vadd.f32 %v2043_v59, %v4651_v56 }
 0x299   : > { %v2100_v59 = vpack.c.bf16 %v2044_v11, %v2044_v11 }
 0x29d   : > { %v4690_v46 = vpop.f32.mrf.mxu2 }
 0x29e   : > { %v2045_v32 = vpop.f32.mrf.mxu3  ;;  %2161 = vmatpush.bf16.xpose.msrb.mxu1 %v2146_v4  ;;  %v1937_v4 = vpop.f32.mrf.mxu1  ;;  %v1997_v48 = vadd.f32 %v4690_v46, %v4636_v60  ;;  %v2084_v46 = vpack.c.bf16 %v1995_v23, %v1995_v23 }
 0x29f   : > { %v2046_v19 = vadd.f32 %v2045_v32, %v4651_v56 }
 0x2a1   : > { %v2101_v22 = vpack.c.bf16 %v2046_v19, %v2046_v19 }
 0x2a5   : > { %v1999_v21 = vpop.f32.mrf.mxu2  ;;  %2162 = vmatmul.bf16.vlgmr.msrb.gmra.mxu1 %v2122_v7  ;;  %v1938_v7 = vadd.f32 %v1937_v4, %v4682_v12 }
 0x2a6   : > { %v2048_v1 = vpop.f32.mrf.mxu3  ;;  %v4703_v9 = vpop.f32.mrf.mxu1  ;;  %v2000_v3 = vadd.f32 %v1999_v21, %v4636_v60  ;;  %v2039_v21 = vadd.f32 %v4666_v34, %v4651_v56  ;;  %v2085_v34 = vpack.c.bf16 %v1997_v48, %v1997_v48 }
 0x2a7   : > { %v2049_v52 = vadd.f32 %v2048_v1, %v4651_v56 }
 0x2a8   : > { %v2086_v49 = vpack.c.bf16 %v2000_v3, %v2000_v3  ;;  %v2098_v4 = vpack.c.bf16 %v2039_v21, %v2039_v21 }
 0x2a9   : > { %v2102_v10 = vpack.c.bf16 %v2049_v52, %v2049_v52 }
 0x2aa   : > { %v2219_v15 = vunpack.c.l.b16 %v2086_v49  ;;  %v2566_v35 = vunpack.c.l.b16 %v2098_v4 }
 0x2ab   : > { %v2570_v1 = vunpack.c.l.b16 %v2102_v10 }
 0x2ad   : > { %v2001_v13 = vpop.f32.mrf.mxu2 }
 0x2ae   : > { %v2050_v26 = vpop.f32.mrf.mxu3  ;;  %v2002_v39 = vadd.f32 %v2001_v13, %v4636_v60  ;;  %v1942_v54 = vpop.f32.mrf.mxu1  ;;  %v2569_v13 = vunpack.c.l.b16 %v2101_v22 }
 0x2af   : > { %v2051_v40 = vadd.f32 %v2050_v26, %v4651_v56  ;;  %v1943_v42 = vadd.f32 %v1942_v54, %v4682_v12 }
 0x2b0   : > { %v2087_v25 = vpack.c.bf16 %v2002_v39, %v2002_v39 }
 0x2b1   : > { %v2103_v55 = vpack.c.bf16 %v2051_v40, %v2051_v40 }
 0x2b2   : > { %v2220_v31 = vunpack.c.l.b16 %v2087_v25 }
 0x2b3   : > { %v2571_v51 = vunpack.c.l.b16 %v2103_v55 }
 0x2b5   : > { %v2004_v33 = vpop.f32.mrf.mxu2  ;;  %2167 = vmatmul.bf16.gmra.mxu1 %v2123_v41  ;;  %v2576_v26 = vpack.c.b16 %v2571_v51, %v2570_v1  ;;  %v2065_v41 = vpack.c.bf16 %v1938_v7, %v1938_v7 }
 0x2b6   : > { %v2053_v14 = vpop.f32.mrf.mxu3  ;;  %v2005_v16 = vadd.f32 %v2004_v33, %v4636_v60  ;;  %v2225_v33 = vpack.c.b16 %v2220_v31, %v2219_v15  ;;  %v1945_v40 = vpop.f32.mrf.mxu1 }
 0x2b7   : > { %v2054_v6 = vadd.f32 %v2053_v14, %v4651_v56  ;;  %v2567_v14 = vunpack.c.l.b16 %v2099_v28  ;;  %v2121_v50 = vunpack.c.l.b16 %v2065_v41  ;;  %v1946_v19 = vadd.f32 %v1945_v40, %v4682_v12 }
 0x2b8   : > { %v2088_v43 = vpack.c.bf16 %v2005_v16, %v2005_v16  ;;  %v2218_v16 = vunpack.c.l.b16 %v2085_v34 }
 0x2b9   : > { %v2104_v5 = vpack.c.bf16 %v2054_v6, %v2054_v6  ;;  %v2120_v6 = vunpack.c.l.b16 %v2064_v38  ;;  %v2574_v63 = vpack.c.b16 %v2567_v14, %v2566_v35 }
 0x2ba   : > { %v2221_v27 = vunpack.c.l.b16 %v2088_v43  ;;  %v1941_v43 = vadd.f32 %v4703_v9, %v4682_v12 }
 0x2bb   : > { %v2572_v61 = vunpack.c.l.b16 %v2104_v5  ;;  %v2125_v2 = vpack.c.b16 %v2121_v50, %v2120_v6 }
 0x2bc   : > { %v2066_v52 = vpack.c.bf16 %v1941_v43, %v1941_v43 }
 0x2bd   : > { %v2006_v44 = vpop.f32.mrf.mxu2 }
 0x2be   : > { %v2007_v30 = vadd.f32 %v2006_v44, %v4636_v60  ;;  %v2055_v8 = vpop.f32.mrf.mxu3  ;;  %v2217_v60 = vunpack.c.l.b16 %v2084_v46 }
 0x2bf   : > { %v2056_v18 = vadd.f32 %v2055_v8, %v4651_v56  ;;  %v2568_v56 = vunpack.c.l.b16 %v2100_v59  ;;  %v1947_v8 = vpop.f32.mrf.mxu1 }
 0x2c0   : > { %v2089_v47 = vpack.c.bf16 %v2007_v30, %v2007_v30  ;;  %v2224_v44 = vpack.c.b16 %v2218_v16, %v2217_v60  ;;  %v2067_v30 = vpack.c.bf16 %v1943_v42, %v1943_v42 }
 0x2c1   : > { %v2105_v57 = vpack.c.bf16 %v2056_v18, %v2056_v18  ;;  %v2575_v17 = vpack.c.b16 %v2569_v13, %v2568_v56  ;;  %v2191_v18 = vunpack.c.l.b16 %v2066_v52 }
 0x2c2   : > { %v2222_v37 = vunpack.c.l.b16 %v2089_v47  ;;  %v2192_v5 = vunpack.c.l.b16 %v2067_v30  ;;  %v1948_v47 = vadd.f32 %v1947_v8, %v4682_v12 }
 0x2c3   : > { %v2573_v20 = vunpack.c.l.b16 %v2105_v57  ;;  %v2068_v57 = vpack.c.bf16 %v1946_v19, %v1946_v19 }
 0x2c4   : > { %v2226_v24 = vpack.c.b16 %v2222_v37, %v2221_v27  ;;  %v2199_v58 = vpack.c.b16 %v2192_v5, %v2191_v18  ;;  %v2069_v55 = vpack.c.bf16 %v1948_v47, %v1948_v47 }
 0x2c5   : > { %v2577_v32 = vpack.c.b16 %v2573_v20, %v2572_v61  ;;  %2172 = vmatmul.bf16.gmra.mxu1 %v2124_v62  ;;  %v2193_v27 = vunpack.c.l.b16 %v2068_v57 }
 0x2c6   : > { %2235 = vmatpush.bf16.xpose.msra.mxu1 %v2226_v24  ;;  %v2194_v3 = vunpack.c.l.b16 %v2069_v55 }
 0x2c7   : > { %2598 = vmatpush.bf16.msra.mxu3 %v2577_v32  ;;  %v1950_v39 = vpop.f32.mrf.mxu1 }
 0x2c8   : > { %v2200_v37 = vpack.c.b16 %v2194_v3, %v2193_v27  ;;  %v1951_v29 = vadd.f32 %v1950_v39, %v4682_v12 }
 0x2ca   : > { %v2070_v11 = vpack.c.bf16 %v1951_v29, %v1951_v29 }
 0x2cb   : > { %2599 = vmatpush.bf16.msra.mxu3 %v2576_v26 }
 0x2cc   : > { %v2195_v61 = vunpack.c.l.b16 %v2070_v11 }
 0x2ce   : > { %2236 = vmatpush.bf16.xpose.msra.mxu1 %v2225_v33 }
 0x2cf   : > { %2600 = vmatpush.bf16.msra.mxu3 %v2575_v17  ;;  %v1952_v9 = vpop.f32.mrf.mxu1 }
 0x2d0   : > { %v1953_v62 = vadd.f32 %v1952_v9, %v4682_v12 }
 0x2d3   : > { %2601 = vmatpush.bf16.msra.mxu3 %v2574_v63 }
 0x2d5   : > { %2177 = vmatmul.bf16.gmra.mxu1 %v2125_v2 }
 0x2d6   : > { %2237 = vmatpush.bf16.xpose.msra.mxu1 %v2224_v44 }
 0x2d7   : > { %v1955_v0 = vpop.f32.mrf.mxu1 }
 0x2d8   : > { %v1956_v45 = vadd.f32 %v1955_v0, %v4682_v12 }
 0x2da   : > { %v2072_v51 = vpack.c.bf16 %v1956_v45, %v1956_v45 }
 0x2dc   : > { %v2197_v49 = vunpack.c.l.b16 %v2072_v51 }
 0x2de   : > { %2238 = vmatpush.bf16.xpose.msra.mxu1 %v2223_v36  ;;  %v2071_v36 = vpack.c.bf16 %v1953_v62, %v1953_v62 }
 0x2df   : > { %v1957_v25 = vpop.f32.mrf.mxu1 }
 0x2e0   : > { %v2196_v10 = vunpack.c.l.b16 %v2071_v36  ;;  %v1958_v24 = vadd.f32 %v1957_v25, %v4682_v12 }
 0x2e2   : > { %v2201_v20 = vpack.c.b16 %v2196_v10, %v2195_v61  ;;  %v2073_v22 = vpack.c.bf16 %v1958_v24, %v1958_v24 }
 0x2e4   : > { %v2198_v32 = vunpack.c.l.b16 %v2073_v22 }
 0x2e5   : > { %2239 = vmatmul.bf16.vlgmr.msra.gmra.mxu1 %v2199_v58 }
 0x2e6   : > { %v2202_v7 = vpack.c.b16 %v2198_v32, %v2197_v49 }
 0x2f5   : > { %2244 = vmatmul.bf16.gmra.mxu1 %v2200_v37 }
 0x305   : > { %2249 = vmatmul.bf16.gmra.mxu1 %v2201_v20 }
 0x315   : > { %2254 = vmatmul.bf16.gmra.mxu1 %v2202_v7 }
 0x322   : > { %v2163_v21 = vpop.f32.mrf.mxu1 }
 0x323   : > { %v2261_v59 = vsel %vm2260_vm0, %v2163_v21, -inf }
 0x324   : > { %2262 = vmax.xlane.f32.xlu0 %v2261_v59 }
 0x32a   : > { %v2165_v1 = vpop.f32.mrf.mxu1 }
 0x32b   : > { %v2264_v54 = vsel %vm2260_vm0, %v2165_v1, -inf }
 0x32c   : > { %2265 = vmax.xlane.f32.xlu0 %v2264_v54 }
 0x332   : > { %v2168_v48 = vpop.f32.mrf.mxu1 }
 0x333   : > { %v2267_v31 = vsel %vm2260_vm0, %v2168_v48, -inf }
 0x334   : > { %2268 = vmax.xlane.f32.xlu1 %v2267_v31 }
 0x33a   : > { %v2170_v12 = vpop.f32.mrf.mxu1 }
 0x33b   : > { %v2270_v53 = vsel %vm2260_vm0, %v2170_v12, -inf }
 0x33c   : > { %2271 = vmax.xlane.f32.xlu1 %v2270_v53 }
 0x342   : > { %v2173_v28 = vpop.f32.mrf.mxu1 }
 0x343   : > { %v2273_v13 = vsel %vm2260_vm0, %v2173_v28, -inf }
 0x344   : > { %2274 = vmax.xlane.f32.xlu2 %v2273_v13 }
 0x34a   : > { %v2175_v26 = vpop.f32.mrf.mxu1 }
 0x34b   : > { %v2276_v23 = vsel %vm2260_vm0, %v2175_v26, -inf }
 0x34c   : > { %2277 = vmax.xlane.f32.xlu2 %v2276_v23 }
 0x352   : > { %v4740_v15 = vpop.f32.mrf.mxu1 }
 0x353   : > { %v2279_v41 = vsel %vm2260_vm0, %v4740_v15, -inf }
 0x354   : > { %2280 = vmax.xlane.f32.xlu0 %v2279_v41 }
 0x35a   : > { %v4744_v4 = vpop.f32.mrf.mxu1 }
 0x35b   : > { %v2282_v56 = vsel %vm2260_vm0, %v4744_v4, -inf }
 0x35c   : > { %2283 = vmax.xlane.f32.xlu1 %v2282_v56 }
 0x362   : > { %v4748_v34 = vpop.f32.mrf.mxu1 }
 0x363   : > { %v2285_v33 = vsel %vm2260_vm0, %v4748_v34, -inf }
 0x364   : > { %2286 = vmax.xlane.f32.xlu1 %v2285_v33 }
 0x36a   : > { %v4752_v46 = vpop.f32.mrf.mxu1 }
 0x36b   : > { %v2288_v30 = vsel %vm2260_vm0, %v4752_v46, -inf }
 0x372   : > { %v4758_v40 = vpop.f32.mrf.mxu1 }
 0x373   : > { %v2291_v47 = vsel %vm2260_vm0, %v4758_v40, -inf }
 0x37a   : > { %v4766_v52 = vpop.f32.mrf.mxu1 }
 0x37b   : > { %v2294_v37 = vsel %vm2260_vm0, %v4766_v52, -inf }
 0x382   : > { %v4776_v3 = vpop.f32.mrf.mxu1 }
 0x383   : > { %v2297_v10 = vsel %vm2260_vm0, %v4776_v3, -inf }
 0x38a   : > { %v4788_v61 = vpop.f32.mrf.mxu1 }
 0x38b   : > { %v2300_v51 = vsel %vm2260_vm0, %v4788_v61, -inf }
 0x392   : > { %v4797_v32 = vpop.f32.mrf.mxu1 }
 0x393   : > { %v2303_v54 = vsel %vm2260_vm0, %v4797_v32, -inf }
 0x397   : > { %v2263_v38 = vpop.xlane.xlu0 %2262 }
 0x398   : > { %v2309_v14 = vsub.f32 %v2163_v21, %v2263_v38 }
 0x39a   : > { %v2325_v17 = vmul.f32 1.442695, %v2309_v14  ;;  %v4806_v31 = vpop.f32.mrf.mxu1 }
 0x39c   : > { %3895 = vpow2.f32 %v2325_v17 }
 0x39f   : > { %v2266_v50 = vpop.xlane.xlu0 %2265 }
 0x3a0   : > { %v2310_v35 = vsub.f32 %v2165_v1, %v2266_v50 }
 0x3a2   : > { %v4754_v16 = vpop.eup %3895  ;;  %v2327_v6 = vmul.f32 1.442695, %v2310_v35 }
 0x3a3   : > { %v2357_v63 = vsel %vm2260_vm0, %v4754_v16, 0.0 }
 0x3a4   : > { %3897 = vpow2.f32 %v2327_v6  ;;  %2358 = vadd.xlane.f32.xlu2 %v2357_v63 }
 0x3a7   : > { %v2269_v60 = vpop.xlane.xlu1 %2268 }
 0x3a8   : > { %v2311_v2 = vsub.f32 %v2168_v48, %v2269_v60 }
 0x3aa   : > { %v4760_v44 = vpop.eup %3897  ;;  %v2329_v42 = vmul.f32 1.442695, %v2311_v2 }
 0x3ab   : > { %v2360_v43 = vsel %vm2260_vm0, %v4760_v44, 0.0 }
 0x3ac   : > { %3899 = vpow2.f32 %v2329_v42  ;;  %2361 = vadd.xlane.f32.xlu0 %v2360_v43  ;;  %2289 = vmax.xlane.f32.xlu2 %v2288_v30 }
 0x3af   : > { %v2272_v8 = vpop.xlane.xlu1 %2271 }
 0x3b0   : > { %v2312_v5 = vsub.f32 %v2170_v12, %v2272_v8 }
 0x3b2   : > { %v4768_v18 = vpop.eup %3899  ;;  %v2331_v58 = vmul.f32 1.442695, %v2312_v5 }
 0x3b3   : > { %v2363_v39 = vsel %vm2260_vm0, %v4768_v18, 0.0 }
 0x3b4   : > { %3901 = vpow2.f32 %v2331_v58  ;;  %2364 = vadd.xlane.f32.xlu0 %v2363_v39  ;;  %2292 = vmax.xlane.f32.xlu2 %v2291_v47 }
 0x3b7   : > { %v2275_v19 = vpop.xlane.xlu2 %2274 }
 0x3b8   : > { %v2313_v55 = vsub.f32 %v2173_v28, %v2275_v19 }
 0x3ba   : > { %v4774_v57 = vpop.eup %3901  ;;  %v2333_v9 = vmul.f32 1.442695, %v2313_v55 }
 0x3bb   : > { %v2366_v27 = vsel %vm2260_vm0, %v4774_v57, 0.0 }
 0x3bc   : > { %3903 = vpow2.f32 %v2333_v9  ;;  %2367 = vadd.xlane.f32.xlu1 %v2366_v27  ;;  %2295 = vmax.xlane.f32.xlu0 %v2294_v37 }
 0x3bf   : > { %v2278_v62 = vpop.xlane.xlu2 %2277 }
 0x3c0   : > { %v2314_v29 = vsub.f32 %v2175_v26, %v2278_v62  ;;  %v2306_v26 = vsel %vm2260_vm0, %v4806_v31, -inf }
 0x3c2   : > { %v4782_v0 = vpop.eup %3903  ;;  %v2335_v36 = vmul.f32 1.442695, %v2314_v29 }
 0x3c3   : > { %v2369_v11 = vsel %vm2260_vm0, %v4782_v0, 0.0 }
 0x3c4   : > { %3905 = vpow2.f32 %v2335_v36  ;;  %2370 = vadd.xlane.f32.xlu1 %v2369_v11  ;;  %2298 = vmax.xlane.f32.xlu0 %v2297_v10 }
 0x3c7   : > { %v2281_v20 = vpop.xlane.xlu0 %2280 }
 0x3c8   : > { %v2315_v25 = vsub.f32 %v4740_v15, %v2281_v20 }
 0x3ca   : > { %v4791_v24 = vpop.eup %3905  ;;  %v2337_v45 = vmul.f32 1.442695, %v2315_v25 }
 0x3cb   : > { %v2372_v22 = vsel %vm2260_vm0, %v4791_v24, 0.0 }
 0x3cc   : > { %3907 = vpow2.f32 %v2337_v45  ;;  %2373 = vadd.xlane.f32.xlu2 %v2372_v22  ;;  %2301 = vmax.xlane.f32.xlu1 %v2300_v51 }
 0x3cf   : > { %v2284_v49 = vpop.xlane.xlu1 %2283 }
 0x3d0   : > { %v2316_v7 = vsub.f32 %v4744_v4, %v2284_v49 }
 0x3d2   : > { %v4800_v21 = vpop.eup %3907  ;;  %v2339_v59 = vmul.f32 1.442695, %v2316_v7 }
 0x3d3   : > { %v2375_v1 = vsel %vm2260_vm0, %v4800_v21, 0.0 }
 0x3d4   : > { %3909 = vpow2.f32 %v2339_v59  ;;  %2376 = vadd.xlane.f32.xlu2 %v2375_v1  ;;  %2304 = vmax.xlane.f32.xlu1 %v2303_v54  ;;  %v3606_v54 = vld [vmem:[#allocation7 + $0xec] sm:$0xf] }
 0x3d7   : > { %v2287_v48 = vpop.xlane.xlu1 %2286 }
 0x3d8   : > { %v2317_v12 = vsub.f32 %v4748_v34, %v2287_v48  ;;  %v3788_v48 = vld [vmem:[#allocation7 + $0xf8] sm:$0xf0] }
 0x3da   : > { %v4809_v53 = vpop.eup %3909  ;;  %v2341_v28 = vmul.f32 1.442695, %v2317_v12  ;;  %v3607_v12 = vor.u32 %v3788_v48, %v3606_v54 }
 0x3db   : > { %v2378_v13 = vsel %vm2260_vm0, %v4809_v53, 0.0 }
 0x3dc   : > { %3911 = vpow2.f32 %v2341_v28  ;;  %2379 = vadd.xlane.f32.xlu0 %v2378_v13  ;;  %2307 = vmax.xlane.f32.xlu2 %v2306_v26 }
 0x3dd   : > { %2699 = vmatpush.bf16.msrb.mxu0 %v3607_v12 }
 0x3e2   : > { %v4815_v23 = vpop.eup %3911 }
 0x3e3   : > { %v2381_v15 = vsel %vm2260_vm0, %v4815_v23, 0.0 }
 0x3e4   : > { %2382 = vadd.xlane.f32.xlu0 %v2381_v15 }
 0x417   : > { %v2359_v41 = vpop.xlane.xlu2 %2358 }
 0x418   : > { %3913 = vrcp.f32 %v2359_v41 }
 0x41e   : > { %v3914_v34 = vpop.eup %3913 }
 0x41f   : > { %v2362_v4 = vpop.xlane.xlu0 %2361  ;;  %v2290_v56 = vpop.xlane.xlu2 %2289  ;;  %v2421_v14 = vmul.f32 %v3914_v34, %v4754_v16 }
 0x420   : > { %3915 = vrcp.f32 %v2362_v4  ;;  %v2318_v33 = vsub.f32 %v4752_v46, %v2290_v56 }
 0x421   : > { %v2437_v50 = vpack.c.bf16 %v2421_v14, %v2421_v14 }
 0x422   : > { %v2343_v38 = vmul.f32 1.442695, %v2318_v33 }
 0x423   : > { %v2461_v30 = vunpack.c.l.b16 %v2437_v50 }
 0x424   : > { %3917 = vpow2.f32 %v2343_v38 }
 0x426   : > { %v3916_v17 = vpop.eup %3915 }
 0x427   : > { %v2422_v35 = vmul.f32 %v3916_v17, %v4760_v44  ;;  %v2365_v6 = vpop.xlane.xlu0 %2364  ;;  %v2293_v63 = vpop.xlane.xlu2 %2292 }
 0x428   : > { %v2319_v60 = vsub.f32 %v4758_v40, %v2293_v63  ;;  %3919 = vrcp.f32 %v2365_v6 }
 0x429   : > { %v2438_v2 = vpack.c.bf16 %v2422_v35, %v2422_v35 }
 0x42a   : > { %v4823_v42 = vpop.eup %3917  ;;  %v2345_v43 = vmul.f32 1.442695, %v2319_v60 }
 0x42b   : > { %v2462_v8 = vunpack.c.l.b16 %v2438_v2  ;;  %v2384_v46 = vsel %vm2260_vm0, %v4823_v42, 0.0 }
 0x42c   : > { %3921 = vpow2.f32 %v2345_v43  ;;  %2385 = vadd.xlane.f32.xlu1 %v2384_v46 }
 0x42d   : > { %v2469_v16 = vpack.c.b16 %v2462_v8, %v2461_v30 }
 0x42e   : > { %v3920_v58 = vpop.eup %3919 }
 0x42f   : > { %3568 = vmatmul.msk.bf16.vlgmr.msra.gmra.mxu2 %vm2260_vm0, %v2469_v16  ;;  %v2368_v44 = vpop.xlane.xlu1 %2367  ;;  %v2296_v5 = vpop.xlane.xlu0 %2295  ;;  %v2423_v19 = vmul.f32 %v3920_v58, %v4768_v18  ;;  %v3787_v58 = vld [vmem:[#allocation7 + $0xd8] sm:$0xf0] }
 0x430   : > { %3923 = vrcp.f32 %v2368_v44  ;;  %v2320_v40 = vsub.f32 %v4766_v52, %v2296_v5 }
 0x431   : > { %v2439_v27 = vpack.c.bf16 %v2423_v19, %v2423_v19  ;;  %v3786_v19 = vld [vmem:[#allocation7 + $0xb8] sm:$0xf0] }
 0x432   : > { %v4829_v39 = vpop.eup %3921  ;;  %v2347_v47 = vmul.f32 1.442695, %v2320_v40 }
 0x433   : > { %v2387_v55 = vsel %vm2260_vm0, %v4829_v39, 0.0  ;;  %v2463_v20 = vunpack.c.l.b16 %v2439_v27 }
 0x434   : > { %3925 = vpow2.f32 %v2347_v47  ;;  %2388 = vadd.xlane.f32.xlu2 %v2387_v55  ;;  %v3598_v47 = vld [vmem:[#allocation7 + $0xac] sm:$0xf] }
 0x435   : > { %v3599_v55 = vor.u32 %v3786_v19, %v3598_v47 }
 0x436   : > { %v3924_v9 = vpop.eup %3923 }
 0x437   : > { %v2424_v37 = vmul.f32 %v3924_v9, %v4774_v57  ;;  %v2371_v62 = vpop.xlane.xlu1 %2370  ;;  %v2299_v29 = vpop.xlane.xlu0 %2298  ;;  %v3785_v9 = vld [vmem:[#allocation7 + $0x98] sm:$0xf0] }
 0x438   : > { %v2321_v36 = vsub.f32 %v4776_v3, %v2299_v29  ;;  %3927 = vrcp.f32 %v2371_v62  ;;  %v3784_v62 = vld [vmem:[#allocation7 + $0x78] sm:$0xf0] }
 0x439   : > { %v2440_v11 = vpack.c.bf16 %v2424_v37, %v2424_v37  ;;  %v3590_v37 = vld [vmem:[#allocation7 + $0x6c] sm:$0xf] }
 0x43a   : > { %v4836_v52 = vpop.eup %3925  ;;  %v2349_v10 = vmul.f32 1.442695, %v2321_v36  ;;  %v3591_v29 = vor.u32 %v3784_v62, %v3590_v37  ;;  %v3586_v36 = vld [vmem:[#allocation7 + $0x4c] sm:$0xf] }
 0x43b   : > { %v2464_v18 = vunpack.c.l.b16 %v2440_v11  ;;  %v2390_v25 = vsel %vm2260_vm0, %v4836_v52, 0.0  ;;  %v3783_v11 = vld [vmem:[#allocation7 + $0x58] sm:$0xf0] }
 0x43c   : > { %3929 = vpow2.f32 %v2349_v10  ;;  %2391 = vadd.xlane.f32.xlu0 %v2390_v25  ;;  %v3587_v10 = vor.u32 %v3783_v11, %v3586_v36 }
 0x43d   : > { %v2470_v45 = vpack.c.b16 %v2464_v18, %v2463_v20  ;;  %v3582_v20 = vld [vmem:[#allocation7 + $0x2c] sm:$0xf]  ;;  %v3782_v18 = vld [vmem:[#allocation7 + $0x38] sm:$0xf0] }
 0x43e   : > { %v3928_v51 = vpop.eup %3927  ;;  %v3583_v25 = vor.u32 %v3782_v18, %v3582_v20 }
 0x43f   : > { %3569 = vmatmul.msk.bf16.gmra.mxu2 %vm2260_vm0, %v2470_v45  ;;  %v2374_v57 = vpop.xlane.xlu2 %2373  ;;  %v2302_v22 = vpop.xlane.xlu1 %2301  ;;  %v2425_v59 = vmul.f32 %v3928_v51, %v4782_v0 }
 0x440   : > { %3931 = vrcp.f32 %v2374_v57  ;;  %v2322_v3 = vsub.f32 %v4788_v61, %v2302_v22  ;;  %v3578_v57 = vld [vmem:[#allocation7 + $0xc] sm:$0xf]  ;;  %v3781_v22 = vld [vmem:[#allocation7 + $0x18] sm:$0xf0] }
 0x441   : > { %v2441_v13 = vpack.c.bf16 %v2425_v59, %v2425_v59  ;;  %v3579_v51 = vor.u32 %v3781_v22, %v3578_v57 }
 0x442   : > { %v4842_v49 = vpop.eup %3929  ;;  %v2351_v7 = vmul.f32 1.442695, %v2322_v3 }
 0x443   : > { %v2393_v1 = vsel %vm2260_vm0, %v4842_v49, 0.0  ;;  %v2465_v34 = vunpack.c.l.b16 %v2441_v13 }
 0x444   : > { %3933 = vpow2.f32 %v2351_v7  ;;  %2394 = vadd.xlane.f32.xlu1 %v2393_v1 }
 0x446   : > { %v3932_v28 = vpop.eup %3931 }
 0x447   : > { %v2426_v26 = vmul.f32 %v3932_v28, %v4791_v24  ;;  %v2377_v15 = vpop.xlane.xlu2 %2376  ;;  %v2305_v61 = vpop.xlane.xlu1 %2304 }
 0x448   : > { %v2323_v41 = vsub.f32 %v4797_v32, %v2305_v61  ;;  %3935 = vrcp.f32 %v2377_v15 }
 0x449   : > { %v2442_v4 = vpack.c.bf16 %v2426_v26, %v2426_v26 }
 0x44a   : > { %v4849_v56 = vpop.eup %3933  ;;  %v2353_v0 = vmul.f32 1.442695, %v2323_v41 }
 0x44b   : > { %v2466_v33 = vunpack.c.l.b16 %v2442_v4  ;;  %v2396_v38 = vsel %vm2260_vm0, %v4849_v56, 0.0 }
 0x44c   : > { %3937 = vpow2.f32 %v2353_v0  ;;  %2397 = vadd.xlane.f32.xlu2 %v2396_v38 }
 0x44d   : > { %v2471_v14 = vpack.c.b16 %v2466_v33, %v2465_v34 }
 0x44e   : > { %v3936_v50 = vpop.eup %3935 }
 0x44f   : > { %3570 = vmatmul.msk.bf16.gmra.mxu2 %vm2260_vm0, %v2471_v14  ;;  %v2380_v24 = vpop.xlane.xlu0 %2379  ;;  %v2308_v17 = vpop.xlane.xlu2 %2307  ;;  %v2427_v63 = vmul.f32 %v3936_v50, %v4800_v21  ;;  %v3602_v21 = vld [vmem:[#allocation7 + $0xcc] sm:$0xf] }
 0x450   : > { %3939 = vrcp.f32 %v2380_v24  ;;  %v2324_v32 = vsub.f32 %v4806_v31, %v2308_v17  ;;  %v3603_v40 = vor.u32 %v3787_v58, %v3602_v21 }
 0x451   : > { %v2443_v43 = vpack.c.bf16 %v2427_v63, %v2427_v63 }
 0x452   : > { %v4855_v35 = vpop.eup %3937  ;;  %v2355_v6 = vmul.f32 1.442695, %v2324_v32  ;;  %2700 = vmatpush.bf16.msrb.mxu0 %v3603_v40 }
 0x453   : > { %v2399_v60 = vsel %vm2260_vm0, %v4855_v35, 0.0  ;;  %v2467_v16 = vunpack.c.l.b16 %v2443_v43 }
 0x454   : > { %3941 = vpow2.f32 %v2355_v6  ;;  %2400 = vadd.xlane.f32.xlu0 %v2399_v60 }
 0x456   : > { %v3940_v2 = vpop.eup %3939  ;;  %2701 = vmatpush.bf16.msrb.mxu0 %v3599_v55 }
 0x457   : > { %v2428_v30 = vmul.f32 %v3940_v2, %v4809_v53  ;;  %v3594_v53 = vld [vmem:[#allocation7 + $0x8c] sm:$0xf]  ;;  %v2383_v45 = vpop.xlane.xlu0 %2382 }
 0x458   : > { %v3595_v27 = vor.u32 %v3785_v9, %v3594_v53  ;;  %3943 = vrcp.f32 %v2383_v45 }
 0x459   : > { %v2444_v8 = vpack.c.bf16 %v2428_v30, %v2428_v30 }
 0x45a   : > { %v4861_v46 = vpop.eup %3941  ;;  %2702 = vmatpush.bf16.msrb.mxu0 %v3595_v27 }
 0x45b   : > { %v2468_v44 = vunpack.c.l.b16 %v2444_v8  ;;  %v2402_v31 = vsel %vm2260_vm0, %v4861_v46, 0.0 }
 0x45c   : > { %2403 = vadd.xlane.f32.xlu1 %v2402_v31 }
 0x45d   : > { %v2472_v5 = vpack.c.b16 %v2468_v44, %v2467_v16 }
 0x45e   : > { %2703 = vmatpush.bf16.msrb.mxu0 %v3591_v29  ;;  %v3944_v7 = vpop.eup %3943 }
 0x45f   : > { %3571 = vmatmul.msk.bf16.gmra.mxu2 %vm2260_vm0, %v2472_v5  ;;  %v2429_v59 = vmul.f32 %v3944_v7, %v4815_v23 }
 0x461   : > { %v2445_v54 = vpack.c.bf16 %v2429_v59, %v2429_v59 }
 0x462   : > { %2704 = vmatpush.bf16.msrb.mxu0 %v3587_v10 }
 0x463   : > { %v2546_v13 = vunpack.c.l.b16 %v2445_v54 }
 0x466   : > { %2705 = vmatpush.bf16.msrb.mxu0 %v3583_v25 }
 0x46a   : > { %2706 = vmatpush.bf16.msrb.mxu0 %v3579_v51 }
 0x49f   : > { %v2386_v3 = vpop.xlane.xlu1 %2385 }
 0x4a0   : > { %3945 = vrcp.f32 %v2386_v3 }
 0x4a6   : > { %v3946_v1 = vpop.eup %3945 }
 0x4a7   : > { %v2430_v48 = vmul.f32 %v3946_v1, %v4823_v42  ;;  %v2389_v12 = vpop.xlane.xlu2 %2388 }
 0x4a8   : > { %3947 = vrcp.f32 %v2389_v12 }
 0x4a9   : > { %v2446_v28 = vpack.c.bf16 %v2430_v48, %v2430_v48 }
 0x4ab   : > { %v2547_v26 = vunpack.c.l.b16 %v2446_v28 }
 0x4ad   : > { %v2554_v15 = vpack.c.b16 %v2547_v26, %v2546_v13 }
 0x4ae   : > { %v3948_v41 = vpop.eup %3947 }
 0x4af   : > { %v2392_v61 = vpop.xlane.xlu0 %2391  ;;  %3572 = vmatmul.msk.bf16.vlgmr.msra.gmra.mxu3 %vm2260_vm0, %v2554_v15  ;;  %v2431_v0 = vmul.f32 %v3948_v41, %v4829_v39 }
 0x4b0   : > { %3949 = vrcp.f32 %v2392_v61 }
 0x4b1   : > { %v2447_v23 = vpack.c.bf16 %v2431_v0, %v2431_v0 }
 0x4b2   : > { %v2518_v4 = vpop.f32.mrf.mxu2 }
 0x4b3   : > { %v2548_v24 = vunpack.c.l.b16 %v2447_v23 }
 0x4b6   : > { %v3950_v34 = vpop.eup %3949 }
 0x4b7   : > { %v2432_v33 = vmul.f32 %v3950_v34, %v4836_v52  ;;  %v2395_v38 = vpop.xlane.xlu1 %2394 }
 0x4b8   : > { %3951 = vrcp.f32 %v2395_v38 }
 0x4b9   : > { %v2448_v42 = vpack.c.bf16 %v2432_v33, %v2432_v33 }
 0x4ba   : > { %v2520_v14 = vpop.f32.mrf.mxu2 }
 0x4bb   : > { %v2549_v17 = vunpack.c.l.b16 %v2448_v42  ;;  %v2623_v50 = vpack.c.bf16 %v2520_v14, %v2518_v4 }
 0x4bd   : > { %2707 = vmatmul.bf16.vlgmr.msrb.gmra.mxu0 %v2623_v50  ;;  %v2555_v32 = vpack.c.b16 %v2549_v17, %v2548_v24 }
 0x4be   : > { %v3952_v63 = vpop.eup %3951 }
 0x4bf   : > { %3573 = vmatmul.msk.bf16.gmra.mxu3 %vm2260_vm0, %v2555_v32  ;;  %v2398_v6 = vpop.xlane.xlu2 %2397  ;;  %v2433_v39 = vmul.f32 %v3952_v63, %v4842_v49 }
 0x4c0   : > { %3953 = vrcp.f32 %v2398_v6 }
 0x4c1   : > { %v2449_v43 = vpack.c.bf16 %v2433_v39, %v2433_v39 }
 0x4c2   : > { %v2523_v60 = vpop.f32.mrf.mxu2 }
 0x4c3   : > { %v2550_v44 = vunpack.c.l.b16 %v2449_v43 }
 0x4c6   : > { %v3954_v2 = vpop.eup %3953 }
 0x4c7   : > { %v2434_v52 = vmul.f32 %v3954_v2, %v4849_v56  ;;  %v2401_v30 = vpop.xlane.xlu0 %2400 }
 0x4c8   : > { %3955 = vrcp.f32 %v2401_v30 }
 0x4c9   : > { %v2450_v8 = vpack.c.bf16 %v2434_v52, %v2434_v52 }
 0x4ca   : > { %v2525_v16 = vpop.f32.mrf.mxu2 }
 0x4cb   : > { %v2551_v31 = vunpack.c.l.b16 %v2450_v8  ;;  %v2624_v5 = vpack.c.bf16 %v2525_v16, %v2523_v60 }
 0x4cd   : > { %2712 = vmatmul.bf16.gmra.mxu0 %v2624_v5  ;;  %v2556_v21 = vpack.c.b16 %v2551_v31, %v2550_v44 }
 0x4ce   : > { %v3956_v40 = vpop.eup %3955 }
 0x4cf   : > { %v2404_v58 = vpop.xlane.xlu1 %2403  ;;  %3574 = vmatmul.msk.bf16.gmra.mxu3 %vm2260_vm0, %v2556_v21  ;;  %v2435_v49 = vmul.f32 %v3956_v40, %v4855_v35  ;;  %v4879_v35 = vld [vmem:[#allocation8 + $0x3] ss:$0 sm:$0xff] }
 0x4d0   : > { %3957 = vrcp.f32 %v2404_v58 }
 0x4d1   : > { %v2451_v56 = vpack.c.bf16 %v2435_v49, %v2435_v49 }
 0x4d2   : > { %v2528_v47 = vpop.f32.mrf.mxu2 }
 0x4d3   : > { %v2552_v27 = vunpack.c.l.b16 %v2451_v56 }
 0x4d6   : > { %v3958_v19 = vpop.eup %3957 }
 0x4d7   : > { %v2436_v55 = vmul.f32 %v3958_v19, %v4861_v46 }
 0x4d9   : > { %v2452_v53 = vpack.c.bf16 %v2436_v55, %v2436_v55 }
 0x4da   : > { %v2530_v9 = vpop.f32.mrf.mxu2 }
 0x4db   : > { %v2553_v37 = vunpack.c.l.b16 %v2452_v53  ;;  %v2625_v62 = vpack.c.bf16 %v2530_v9, %v2528_v47 }
 0x4dd   : > { %2717 = vmatmul.bf16.gmra.mxu0 %v2625_v62  ;;  %v2557_v29 = vpack.c.b16 %v2553_v37, %v2552_v27 }
 0x4df   : > { %3575 = vmatmul.msk.bf16.gmra.mxu3 %vm2260_vm0, %v2557_v29 }
 0x4e2   : > { %v2533_v36 = vpop.f32.mrf.mxu2 }
 0x4ea   : > { %v2535_v11 = vpop.f32.mrf.mxu2 }
 0x4eb   : > { %v2626_v10 = vpack.c.bf16 %v2535_v11, %v2533_v36 }
 0x4ed   : > { %2722 = vmatmul.bf16.gmra.mxu0 %v2626_v10 }
 0x532   : > { %v2603_v20 = vpop.f32.mrf.mxu3 }
 0x53a   : > { %v2605_v18 = vpop.f32.mrf.mxu3  ;;  %v2708_v25 = vpop.f32.mrf.mxu0 }
 0x53b   : > { %v2627_v46 = vpack.c.bf16 %v2605_v18, %v2603_v20  ;;  %v2709_v45 = vadd.f32 %v4879_v35, %v2708_v25 }
 0x53d   : > { %2748 = vst [vmem:[%s4882_s26] sm:$0xff] %v2709_v45  ;;  %2727 = vmatmul.bf16.gmra.mxu0 %v2627_v46 }
 0x542   : > { %v2608_v57 = vpop.f32.mrf.mxu3  ;;  %v2710_v22 = vpop.f32.mrf.mxu0 }
 0x543   : > { %v2711_v51 = vadd.f32 %v4879_v35, %v2710_v22 }
 0x545   : > { %2749 = vst [vmem:[%s4882_s26 + $0x8] sm:$0xff] %v2711_v51 }
 0x54a   : > { %v2610_v3 = vpop.f32.mrf.mxu3  ;;  %v2713_v7 = vpop.f32.mrf.mxu0 }
 0x54b   : > { %v2628_v59 = vpack.c.bf16 %v2610_v3, %v2608_v57  ;;  %v2714_v1 = vadd.f32 %v4879_v35, %v2713_v7 }
 0x54d   : > { %2750 = vst [vmem:[%s4882_s26 + $0x10] sm:$0xff] %v2714_v1  ;;  %2732 = vmatmul.bf16.gmra.mxu0 %v2628_v59 }
 0x552   : > { %v2613_v54 = vpop.f32.mrf.mxu3  ;;  %v2715_v48 = vpop.f32.mrf.mxu0 }
 0x553   : > { %v2716_v12 = vadd.f32 %v4879_v35, %v2715_v48 }
 0x555   : > { %2751 = vst [vmem:[%s4882_s26 + $0x18] sm:$0xff] %v2716_v12 }
 0x55a   : > { %v2615_v28 = vpop.f32.mrf.mxu3  ;;  %v2718_v13 = vpop.f32.mrf.mxu0 }
 0x55b   : > { %v2629_v26 = vpack.c.bf16 %v2615_v28, %v2613_v54  ;;  %v2719_v15 = vadd.f32 %v4879_v35, %v2718_v13 }
 0x55d   : > { %2752 = vst [vmem:[%s4882_s26 + $0x20] sm:$0xff] %v2719_v15  ;;  %2737 = vmatmul.bf16.gmra.mxu0 %v2629_v26 }
 0x562   : > { %v2618_v61 = vpop.f32.mrf.mxu3  ;;  %v2720_v41 = vpop.f32.mrf.mxu0 }
 0x563   : > { %v2721_v4 = vadd.f32 %v4879_v35, %v2720_v41 }
 0x565   : > { %2753 = vst [vmem:[%s4882_s26 + $0x28] sm:$0xff] %v2721_v4 }
 0x56a   : > { %v2620_v0 = vpop.f32.mrf.mxu3  ;;  %v2723_v34 = vpop.f32.mrf.mxu0 }
 0x56b   : > { %v2630_v23 = vpack.c.bf16 %v2620_v0, %v2618_v61  ;;  %v2724_v33 = vadd.f32 %v4879_v35, %v2723_v34 }
 0x56d   : > { %2754 = vst [vmem:[%s4882_s26 + $0x30] sm:$0xff] %v2724_v33  ;;  %2742 = vmatmul.bf16.gmra.mxu0 %v2630_v23 }
 0x572   : > { %v2725_v38 = vpop.f32.mrf.mxu0 }
 0x573   : > { %v2726_v42 = vadd.f32 %v4879_v35, %v2725_v38 }
 0x575   : > { %2755 = vst [vmem:[%s4882_s26 + $0x38] sm:$0xff] %v2726_v42 }
 0x5ba   : > { %v2728_v14 = vpop.f32.mrf.mxu0 }
 0x5bb   : > { %v2729_v24 = vadd.f32 %v4879_v35, %v2728_v14 }
 0x5bd   : > { %2756 = vst [vmem:[%s4882_s26 + $0x40] sm:$0xff] %v2729_v24 }
 0x5c2   : > { %v2730_v17 = vpop.f32.mrf.mxu0 }
 0x5c3   : > { %v2731_v50 = vadd.f32 %v4879_v35, %v2730_v17 }
 0x5c5   : > { %2757 = vst [vmem:[%s4882_s26 + $0x48] sm:$0xff] %v2731_v50 }
 0x5ca   : > { %v2733_v32 = vpop.f32.mrf.mxu0 }
 0x5cb   : > { %v2734_v6 = vadd.f32 %v4879_v35, %v2733_v32 }
 0x5cd   : > { %2758 = vst [vmem:[%s4882_s26 + $0x50] sm:$0xff] %v2734_v6 }
 0x5d2   : > { %v2735_v63 = vpop.f32.mrf.mxu0 }
 0x5d3   : > { %v2736_v60 = vadd.f32 %v4879_v35, %v2735_v63 }
 0x5d5   : > { %2759 = vst [vmem:[%s4882_s26 + $0x58] sm:$0xff] %v2736_v60 }
 0x5da   : > { %v2738_v39 = vpop.f32.mrf.mxu0 }
 0x5db   : > { %v2739_v2 = vadd.f32 %v4879_v35, %v2738_v39 }
 0x5dd   : > { %2760 = vst [vmem:[%s4882_s26 + $0x60] sm:$0xff] %v2739_v2 }
 0x5e2   : > { %v2740_v43 = vpop.f32.mrf.mxu0 }
 0x5e3   : > { %v2741_v52 = vadd.f32 %v4879_v35, %v2740_v43 }
 0x5e5   : > { %2761 = vst [vmem:[%s4882_s26 + $0x68] sm:$0xff] %v2741_v52 }
 0x5ea   : > { %v2743_v30 = vpop.f32.mrf.mxu0 }
 0x5eb   : > { %v2744_v8 = vadd.f32 %v4879_v35, %v2743_v30 }
 0x5ed   : > { %2762 = vst [vmem:[%s4882_s26 + $0x70] sm:$0xff] %v2744_v8 }
 0x5f2   : > { %v2745_v16 = vpop.f32.mrf.mxu0 }
 0x5f3   : > { %v2746_v44 = vadd.f32 %v4879_v35, %v2745_v16 }
 0x5f5   : > { %2763 = vst [vmem:[%s4882_s26 + $0x78] sm:$0xff] %v2746_v44 }
 0x5f6   : > { %4106 = shalt.err (!%p4103_p10)
}
 0x5f7   : > { %s4164_s10 = smov 128   ;;  %s4165_s24 = smov 8  }
 0x5f8   : > { %3823 = dma.vmem_to_hbm [thread:$0]  (%p4274_p7), %s2778_s27, 2048, %s2780_s28, %s2765_s29, %s4164_s10, %s4164_s10, %s4165_s24  }
 0x5f9 PF: > { %s2794_s21 = sand.u32 1, %s4141_s15   ;;  %p4960_p12 = scmp.ge.s32.totalorder %s4153_s18, 2 }
 0x5fa   : > { %s2795_s26 = scalar_lea.sflag [#allocation4], %s2794_s21 }
 0x5fb   : > { %p3840_p13 = pnand %p4960_p12, %p4226_p6 }
 0x5fd   : > { %p3841_p0 = pneg %p3840_p13 }
 0x5ff   : > { %4136 = dma.done.wait (%p3841_p0), %s2795_s26, 2048  }
 0x600   : > { %4138 = vsyncadd (%p3841_p0), %s2795_s26, 4294965248  ;;  %p19_p3 = scmp.ge.s32.totalorder %s4260_s25, 4   ;;  %s4961_s15 = smov %s4145_s16 }
 0x601   : > { %s4962_s16 = smov %s4149_s17  ;;  %s4963_s17 = smov %s4270_s30 }
 0x602   : > { %s4964_s18 = smov %s4260_s25  ;;  %21 = sbr.rel (!%p19_p3) target bundleno = 7 (0x7), region = 93 }
 0x607   :  { %2801 = vsyncpa [#allocation3], 1 }
 0x608   :  { %2803 = vsyncpa [#allocation3 + $0x1], 1 }
 0x609   :  { %2804 = vsyncpa [#allocation6], 1 }
 0x60a   :  { %2805 = vsyncpa [#allocation9], 1 }
 0x60b   :  { %2806 = vsyncpa [#allocation4], 1 }
 0x60c   :  { %2808 = vsyncpa [#allocation4 + $0x1], 1 }

</bundles_post_ra>
